<compile_context>
chip_gen: v5e
topology: v5e:2x2
jax: 0.10.0
libtpu: 0.0.40
codegen_flags: <defaults>
</compile_context>

<pallas_src>
import functools
import math

import jax
import jax.numpy as jnp
from jax import lax
from jax.experimental import pallas as pl
from jax.experimental.pallas import tpu as pltpu


def _fused_encoder_kernel(x_ref,
                          wqkv_ref, bqkv_ref, wo_ref, bo_ref,
                          w1_ref, b1_ref, w2_ref, b2_ref,
                          ln1w_ref, ln1b_ref, ln2w_ref, ln2b_ref,
                          out_ref, ctx_ref, *, num_heads):
    """One grid step == one encoder layer applied to one batch element's slab.

    Activations are carried across the layer axis in out_ref (same block index
    for every layer -> resident in VMEM, flushed to HBM once per batch slab).
    """
    l = pl.program_id(1)
    eps = 1e-5

    @pl.when(l == 0)
    def _():
        out_ref[...] = x_ref[...]

    x = out_ref[...]                                   # (S, E) f32
    S, E = x.shape
    hd = E // num_heads

    # ---------------- fused QKV projection (one lane-dense MXU matmul) ------
    # wqkv: (E, 3E) bf16, q-scale folded in; bqkv: (1, 3E) f32 (q part scaled).
    qkv = jnp.dot(x.astype(jnp.bfloat16), wqkv_ref[0],
                  preferred_element_type=jnp.float32) + bqkv_ref[0]  # (S, 3E)

    # ---------------- per-head attention (per batch element, no mask) -------
    # Tiny (S,S) score blocks; probabilities via one EUP reciprocal per row.
    # NOTE: approx=True reciprocal gives ~1e-3 rel. error vs torch.softmax;
    # acceptable for inference.
    for h in range(num_heads):
        c0 = h * hd
        qh = qkv[:, c0:c0 + hd]                        # (S, hd)
        kh = qkv[:, E + c0:E + c0 + hd]
        vh = qkv[:, 2 * E + c0:2 * E + c0 + hd]
        s = lax.dot_general(qh, kh, (((1,), (1,)), ((), ())),
                            preferred_element_type=jnp.float32)      # (S, S)
        s = s - jnp.max(s, axis=-1, keepdims=True)
        p = jnp.exp(s)
        p = p * pl.reciprocal(jnp.sum(p, axis=-1, keepdims=True), approx=True)
        ctx_ref[:, pl.ds(c0, hd)] = jnp.dot(p, vh,
                                            preferred_element_type=jnp.float32)

    # ---------------- out-projection: single (S,E)@(E,E) matmul -------------
    attn = jnp.dot(ctx_ref[...].astype(jnp.bfloat16), wo_ref[0],
                   preferred_element_type=jnp.float32) + bo_ref[0]   # (S, E)

    # ---------------- residual + layernorm 1 (dropout == identity) ----------
    y = x + attn
    mu = jnp.mean(y, axis=-1, keepdims=True)
    var = jnp.mean((y - mu) ** 2, axis=-1, keepdims=True)
    y = (y - mu) * lax.rsqrt(var + eps) * ln1w_ref[0] + ln1b_ref[0]

    # ---------------- feedforward (bf16 weights, f32 accumulation) ----------
    h1 = jnp.dot(y.astype(jnp.bfloat16), w1_ref[0],
                 preferred_element_type=jnp.float32) + b1_ref[0]     # (S, F)
    h1 = jnp.maximum(h1, 0.0)
    ff = jnp.dot(h1.astype(jnp.bfloat16), w2_ref[0],
                 preferred_element_type=jnp.float32) + b2_ref[0]     # (S, E)

    # ---------------- residual + layernorm 2 --------------------------------
    z = y + ff
    mu = jnp.mean(z, axis=-1, keepdims=True)
    var = jnp.mean((z - mu) ** 2, axis=-1, keepdims=True)
    z = (z - mu) * lax.rsqrt(var + eps) * ln2w_ref[0] + ln2b_ref[0]

    out_ref[...] = z


def _layer_spec(arr):
    """BlockSpec selecting one layer slice of a layer-stacked weight tensor."""
    trailing = tuple(int(d) for d in arr.shape[1:])
    zeros = (0,) * len(trailing)
    return pl.BlockSpec((1,) + trailing, lambda b, l, _z=zeros: (l,) + _z)


def fused_encoder(x_ne, params, *, batch, seq_len, num_heads):
    """x_ne: (B*S, E) batch-major flattened tokens; params: layer-stacked."""
    N, E = x_ne.shape
    assert N == batch * seq_len
    order = ["wqkv", "bqkv", "wo", "bo", "w1", "b1", "w2", "b2",
             "ln1_w", "ln1_b", "ln2_w", "ln2_b"]
    weights = [params[k] for k in order]
    num_layers = weights[0].shape[0]

    kernel = functools.partial(_fused_encoder_kernel, num_heads=num_heads)
    return pl.pallas_call(
        kernel,
        out_shape=jax.ShapeDtypeStruct((N, E), jnp.float32),
        grid=(batch, num_layers),
        in_specs=[pl.BlockSpec((seq_len, E), lambda b, l: (b, 0))] +
                 [_layer_spec(w) for w in weights],
        out_specs=pl.BlockSpec((seq_len, E), lambda b, l: (b, 0)),
        scratch_shapes=[pltpu.VMEM((seq_len, E), jnp.float32)],   # packed ctx
        compiler_params=pltpu.CompilerParams(
            dimension_semantics=("parallel", "arbitrary")),
    )(x_ne, *weights)


def init_layer_params_torch(key, E, F):
    """Parameters in PyTorch nn.MultiheadAttention / nn.Linear layout."""
    ks = jax.random.split(key, 8)

    def u(k, shape, fan_in):
        bound = 1.0 / math.sqrt(fan_in)
        return jax.random.uniform(k, shape, jnp.float32, -bound, bound)

    return dict(
        in_proj_weight=u(ks[0], (3 * E, E), E),
        in_proj_bias=u(ks[1], (3 * E,), E),
        out_proj_weight=u(ks[2], (E, E), E),
        out_proj_bias=u(ks[3], (E,), E),
        linear1_weight=u(ks[4], (F, E), E),
        linear1_bias=u(ks[5], (F,), E),
        linear2_weight=u(ks[6], (E, F), F),
        linear2_bias=u(ks[7], (E,), F),
        ln1_weight=jnp.ones((E,), jnp.float32),
        ln1_bias=jnp.zeros((E,), jnp.float32),
        ln2_weight=jnp.ones((E,), jnp.float32),
        ln2_bias=jnp.zeros((E,), jnp.float32),
    )


def prepare_params(layer_params, num_heads):
    """One-time repack: fused Wqkv (E,3E) with q-scale folded in, pre-transposed
    out-proj / FFN weights, matmul weights cast to bf16, layer-stacked."""
    E = layer_params[0]["out_proj_weight"].shape[0]
    hd = E // num_heads
    scale = 1.0 / math.sqrt(hd)

    def per_layer(p):
        wqkv = p["in_proj_weight"].T                        # (E, 3E)
        bqkv = p["in_proj_bias"]                            # (3E,)
        wqkv = wqkv.at[:, :E].multiply(scale)               # fold q-scale
        bqkv = bqkv.at[:E].multiply(scale)
        return dict(
            wqkv=wqkv.astype(jnp.bfloat16),
            bqkv=bqkv.reshape(1, 3 * E).astype(jnp.float32),
            wo=p["out_proj_weight"].T.astype(jnp.bfloat16),           # (E, E)
            bo=p["out_proj_bias"].reshape(1, E).astype(jnp.float32),
            w1=p["linear1_weight"].T.astype(jnp.bfloat16),            # (E, F)
            b1=p["linear1_bias"].reshape(1, -1).astype(jnp.float32),
            w2=p["linear2_weight"].T.astype(jnp.bfloat16),            # (F, E)
            b2=p["linear2_bias"].reshape(1, E).astype(jnp.float32),
            ln1_w=p["ln1_weight"].reshape(1, E),
            ln1_b=p["ln1_bias"].reshape(1, E),
            ln2_w=p["ln2_weight"].reshape(1, E),
            ln2_b=p["ln2_bias"].reshape(1, E),
        )

    repacked = [per_layer(p) for p in layer_params]
    return {k: jnp.stack([r[k] for r in repacked], axis=0) for k in repacked[0]}


def my_encoder(x_sbe, stacked_params, num_heads):
    """x_sbe: (S, B, E) — PyTorch MultiheadAttention (batch_first=False) layout."""
    S, B, E = x_sbe.shape
    x = jnp.transpose(x_sbe, (1, 0, 2)).reshape(B * S, E)
    y = fused_encoder(x, stacked_params, batch=B, seq_len=S, num_heads=num_heads)
    return jnp.transpose(y.reshape(B, S, E), (1, 0, 2))


if __name__ == "__main__":
    # MyEncoder builds each layer with MyEncoderLayer defaults:
    # attention_heads=8, feedforward_size=1024.
    num_layers = 2
    input_size = 32          # embed dim, divisible by 8 heads
    num_heads = 8
    ff_size = 1024
    seq, batch = 8, 2

    key = jax.random.PRNGKey(0)
    k_x, *k_layers = jax.random.split(key, num_layers + 1)

    x = jax.random.normal(k_x, (seq, batch, input_size), jnp.float32)
    torch_layout = [init_layer_params_torch(k, input_size, ff_size)
                    for k in k_layers]
    params = prepare_params(torch_layout, num_heads)

    out = my_encoder(x, params, num_heads)
    out = jax.block_until_ready(out)
    assert out.shape == (seq, batch, input_size)
    assert bool(jnp.all(jnp.isfinite(out)))
    print("KERNEL_OK")
</pallas_src>

<mosaic_0001>
module attributes {stable_mosaic.version = 11 : i64} {
  func.func @_fused_encoder_kernel(%arg0: i32, %arg1: i32, %arg2: memref<8x32xf32, #tpu.memory_space<vmem>>, %arg3: memref<1x32x96xbf16, #tpu.memory_space<vmem>>, %arg4: memref<1x1x96xf32, #tpu.memory_space<vmem>>, %arg5: memref<1x32x32xbf16, #tpu.memory_space<vmem>>, %arg6: memref<1x1x32xf32, #tpu.memory_space<vmem>>, %arg7: memref<1x32x1024xbf16, #tpu.memory_space<vmem>>, %arg8: memref<1x1x1024xf32, #tpu.memory_space<vmem>>, %arg9: memref<1x1024x32xbf16, #tpu.memory_space<vmem>>, %arg10: memref<1x1x32xf32, #tpu.memory_space<vmem>>, %arg11: memref<1x1x32xf32, #tpu.memory_space<vmem>>, %arg12: memref<1x1x32xf32, #tpu.memory_space<vmem>>, %arg13: memref<1x1x32xf32, #tpu.memory_space<vmem>>, %arg14: memref<1x1x32xf32, #tpu.memory_space<vmem>>, %arg15: memref<8x32xf32, #tpu.memory_space<vmem>>, %arg16: memref<8x32xf32, #tpu.memory_space<vmem>>) attributes {dimension_semantics = [#tpu.dimension_semantics<parallel>, #tpu.dimension_semantics<arbitrary>], iteration_bounds = array<i64: 2, 2>, scalar_prefetch = 0 : i64, scratch_operands = 1 : i64, tpu.core_type = #tpu.core_type<tc>, window_params = [{transform_indices = @transform_0, window_bounds = array<i64: 8, 32>}, {transform_indices = @transform_1, window_bounds = array<i64: 1, 32, 96>}, {transform_indices = @transform_2, window_bounds = array<i64: 1, 1, 96>}, {transform_indices = @transform_3, window_bounds = array<i64: 1, 32, 32>}, {transform_indices = @transform_4, window_bounds = array<i64: 1, 1, 32>}, {transform_indices = @transform_5, window_bounds = array<i64: 1, 32, 1024>}, {transform_indices = @transform_6, window_bounds = array<i64: 1, 1, 1024>}, {transform_indices = @transform_7, window_bounds = array<i64: 1, 1024, 32>}, {transform_indices = @transform_8, window_bounds = array<i64: 1, 1, 32>}, {transform_indices = @transform_9, window_bounds = array<i64: 1, 1, 32>}, {transform_indices = @transform_10, window_bounds = array<i64: 1, 1, 32>}, {transform_indices = @transform_11, window_bounds = array<i64: 1, 1, 32>}, {transform_indices = @transform_12, window_bounds = array<i64: 1, 1, 32>}, {transform_indices = @transform_13, window_bounds = array<i64: 8, 32>}]} {
    %c0_i32 = arith.constant 0 : i32
    %0 = arith.cmpi eq, %arg1, %c0_i32 : i32
    %1 = arith.extui %0 : i1 to i32
    %c0_i32_0 = arith.constant 0 : i32
    %2 = arith.cmpi ne, %1, %c0_i32_0 : i32
    scf.if %2 {
      %c0_97 = arith.constant 0 : index
      %c0_98 = arith.constant 0 : index
      %222 = vector.load %arg2[%c0_97, %c0_98] : memref<8x32xf32, #tpu.memory_space<vmem>>, vector<8x32xf32>
      %c0_99 = arith.constant 0 : index
      %c0_100 = arith.constant 0 : index
      %223 = vector.load %arg15[%c0_99, %c0_100] : memref<8x32xf32, #tpu.memory_space<vmem>>, vector<8x32xf32>
      tpu.vector_store %arg15[%c0_99, %c0_100], %222 {strides = array<i32>} : memref<8x32xf32, #tpu.memory_space<vmem>>, vector<8x32xf32>,
    } else {
    }
    %c0 = arith.constant 0 : index
    %c0_1 = arith.constant 0 : index
    %3 = vector.load %arg15[%c0, %c0_1] : memref<8x32xf32, #tpu.memory_space<vmem>>, vector<8x32xf32>
    %4 = arith.truncf %3 : vector<8x32xf32> to vector<8x32xbf16>
    %c0_2 = arith.constant 0 : index
    %c0_3 = arith.constant 0 : index
    %c0_4 = arith.constant 0 : index
    %5 = vector.load %arg3[%c0_2, %c0_3, %c0_4] : memref<1x32x96xbf16, #tpu.memory_space<vmem>>, vector<1x32x96xbf16>
    %6 = vector.shape_cast %5 : vector<1x32x96xbf16> to vector<32x96xbf16>
    %cst = arith.constant dense<0.000000e+00> : vector<8x96xf32>
    %7 = tpu.matmul %4, %6, %cst {dimension_numbers = #tpu.dot_dimension_numbers<[1], [0], [0], [1], [0, 0, 1, 1], [], []>} : vector<8x32xbf16>, vector<32x96xbf16>, vector<8x96xf32> -> vector<8x96xf32>
    %c0_5 = arith.constant 0 : index
    %c0_6 = arith.constant 0 : index
    %c0_7 = arith.constant 0 : index
    %8 = vector.load %arg4[%c0_5, %c0_6, %c0_7] : memref<1x1x96xf32, #tpu.memory_space<vmem>>, vector<1x1x96xf32>
    %9 = vector.shape_cast %8 : vector<1x1x96xf32> to vector<1x96xf32>
    %10 = vector.broadcast %9 : vector<1x96xf32> to vector<8x96xf32>
    %11 = arith.addf %7, %10 : vector<8x96xf32>
    %12 = vector.extract_strided_slice %11 {offsets = [0, 0], sizes = [8, 4], strides = [1, 1]} : vector<8x96xf32> to vector<8x4xf32>
    %13 = vector.extract_strided_slice %11 {offsets = [0, 32], sizes = [8, 4], strides = [1, 1]} : vector<8x96xf32> to vector<8x4xf32>
    %14 = vector.extract_strided_slice %11 {offsets = [0, 64], sizes = [8, 4], strides = [1, 1]} : vector<8x96xf32> to vector<8x4xf32>
    %cst_8 = arith.constant dense<0.000000e+00> : vector<8x8xf32>
    %15 = tpu.matmul %12, %13, %cst_8 {dimension_numbers = #tpu.dot_dimension_numbers<[1], [1], [0], [0], [0, 0, 1, 0], [], []>} : vector<8x4xf32>, vector<8x4xf32>, vector<8x8xf32> -> vector<8x8xf32>
    %cst_9 = arith.constant dense<0xFF800000> : vector<8xf32>
    %16 = vector.multi_reduction <maximumf>, %15, %cst_9 [1] : vector<8x8xf32> to vector<8xf32>
    %17 = vector.shape_cast %16 : vector<8xf32> to vector<8x1xf32>
    %18 = vector.broadcast %17 : vector<8x1xf32> to vector<8x8xf32>
    %19 = arith.subf %15, %18 : vector<8x8xf32>
    %20 = math.exp %19 : vector<8x8xf32>
    %cst_10 = arith.constant dense<0.000000e+00> : vector<8xf32>
    %21 = vector.multi_reduction <add>, %20, %cst_10 [1] : vector<8x8xf32> to vector<8xf32>
    %22 = vector.shape_cast %21 : vector<8xf32> to vector<8x1xf32>
    %23 = tpu.reciprocal %22 {approx = true} : vector<8x1xf32> -> vector<8x1xf32>
    %24 = vector.broadcast %23 : vector<8x1xf32> to vector<8x8xf32>
    %25 = arith.mulf %20, %24 : vector<8x8xf32>
    %cst_11 = arith.constant dense<0.000000e+00> : vector<8x4xf32>
    %26 = tpu.matmul %25, %14, %cst_11 {dimension_numbers = #tpu.dot_dimension_numbers<[1], [0], [0], [1], [0, 0, 1, 1], [], []>} : vector<8x8xf32>, vector<8x4xf32>, vector<8x4xf32> -> vector<8x4xf32>
    %c0_12 = arith.constant 0 : index
    %c0_13 = arith.constant 0 : index
    %27 = vector.load %arg16[%c0_12, %c0_13] : memref<8x32xf32, #tpu.memory_space<vmem>>, vector<8x4xf32>
    tpu.vector_store %arg16[%c0_12, %c0_13], %26 {strides = array<i32>} : memref<8x32xf32, #tpu.memory_space<vmem>>, vector<8x4xf32>,
    %28 = vector.extract_strided_slice %11 {offsets = [0, 4], sizes = [8, 4], strides = [1, 1]} : vector<8x96xf32> to vector<8x4xf32>
    %29 = vector.extract_strided_slice %11 {offsets = [0, 36], sizes = [8, 4], strides = [1, 1]} : vector<8x96xf32> to vector<8x4xf32>
    %30 = vector.extract_strided_slice %11 {offsets = [0, 68], sizes = [8, 4], strides = [1, 1]} : vector<8x96xf32> to vector<8x4xf32>
    %cst_14 = arith.constant dense<0.000000e+00> : vector<8x8xf32>
    %31 = tpu.matmul %28, %29, %cst_14 {dimension_numbers = #tpu.dot_dimension_numbers<[1], [1], [0], [0], [0, 0, 1, 0], [], []>} : vector<8x4xf32>, vector<8x4xf32>, vector<8x8xf32> -> vector<8x8xf32>
    %cst_15 = arith.constant dense<0xFF800000> : vector<8xf32>
    %32 = vector.multi_reduction <maximumf>, %31, %cst_15 [1] : vector<8x8xf32> to vector<8xf32>
    %33 = vector.shape_cast %32 : vector<8xf32> to vector<8x1xf32>
    %34 = vector.broadcast %33 : vector<8x1xf32> to vector<8x8xf32>
    %35 = arith.subf %31, %34 : vector<8x8xf32>
    %36 = math.exp %35 : vector<8x8xf32>
    %cst_16 = arith.constant dense<0.000000e+00> : vector<8xf32>
    %37 = vector.multi_reduction <add>, %36, %cst_16 [1] : vector<8x8xf32> to vector<8xf32>
    %38 = vector.shape_cast %37 : vector<8xf32> to vector<8x1xf32>
    %39 = tpu.reciprocal %38 {approx = true} : vector<8x1xf32> -> vector<8x1xf32>
    %40 = vector.broadcast %39 : vector<8x1xf32> to vector<8x8xf32>
    %41 = arith.mulf %36, %40 : vector<8x8xf32>
    %cst_17 = arith.constant dense<0.000000e+00> : vector<8x4xf32>
    %42 = tpu.matmul %41, %30, %cst_17 {dimension_numbers = #tpu.dot_dimension_numbers<[1], [0], [0], [1], [0, 0, 1, 1], [], []>} : vector<8x8xf32>, vector<8x4xf32>, vector<8x4xf32> -> vector<8x4xf32>
    %c0_18 = arith.constant 0 : index
    %c4 = arith.constant 4 : index
    %43 = vector.load %arg16[%c0_18, %c4] : memref<8x32xf32, #tpu.memory_space<vmem>>, vector<8x4xf32>
    tpu.vector_store %arg16[%c0_18, %c4], %42 {strides = array<i32>} : memref<8x32xf32, #tpu.memory_space<vmem>>, vector<8x4xf32>,
    %44 = vector.extract_strided_slice %11 {offsets = [0, 8], sizes = [8, 4], strides = [1, 1]} : vector<8x96xf32> to vector<8x4xf32>
    %45 = vector.extract_strided_slice %11 {offsets = [0, 40], sizes = [8, 4], strides = [1, 1]} : vector<8x96xf32> to vector<8x4xf32>
    %46 = vector.extract_strided_slice %11 {offsets = [0, 72], sizes = [8, 4], strides = [1, 1]} : vector<8x96xf32> to vector<8x4xf32>
    %cst_19 = arith.constant dense<0.000000e+00> : vector<8x8xf32>
    %47 = tpu.matmul %44, %45, %cst_19 {dimension_numbers = #tpu.dot_dimension_numbers<[1], [1], [0], [0], [0, 0, 1, 0], [], []>} : vector<8x4xf32>, vector<8x4xf32>, vector<8x8xf32> -> vector<8x8xf32>
    %cst_20 = arith.constant dense<0xFF800000> : vector<8xf32>
    %48 = vector.multi_reduction <maximumf>, %47, %cst_20 [1] : vector<8x8xf32> to vector<8xf32>
    %49 = vector.shape_cast %48 : vector<8xf32> to vector<8x1xf32>
    %50 = vector.broadcast %49 : vector<8x1xf32> to vector<8x8xf32>
    %51 = arith.subf %47, %50 : vector<8x8xf32>
    %52 = math.exp %51 : vector<8x8xf32>
    %cst_21 = arith.constant dense<0.000000e+00> : vector<8xf32>
    %53 = vector.multi_reduction <add>, %52, %cst_21 [1] : vector<8x8xf32> to vector<8xf32>
    %54 = vector.shape_cast %53 : vector<8xf32> to vector<8x1xf32>
    %55 = tpu.reciprocal %54 {approx = true} : vector<8x1xf32> -> vector<8x1xf32>
    %56 = vector.broadcast %55 : vector<8x1xf32> to vector<8x8xf32>
    %57 = arith.mulf %52, %56 : vector<8x8xf32>
    %cst_22 = arith.constant dense<0.000000e+00> : vector<8x4xf32>
    %58 = tpu.matmul %57, %46, %cst_22 {dimension_numbers = #tpu.dot_dimension_numbers<[1], [0], [0], [1], [0, 0, 1, 1], [], []>} : vector<8x8xf32>, vector<8x4xf32>, vector<8x4xf32> -> vector<8x4xf32>
    %c0_23 = arith.constant 0 : index
    %c8 = arith.constant 8 : index
    %59 = vector.load %arg16[%c0_23, %c8] : memref<8x32xf32, #tpu.memory_space<vmem>>, vector<8x4xf32>
    tpu.vector_store %arg16[%c0_23, %c8], %58 {strides = array<i32>} : memref<8x32xf32, #tpu.memory_space<vmem>>, vector<8x4xf32>,
    %60 = vector.extract_strided_slice %11 {offsets = [0, 12], sizes = [8, 4], strides = [1, 1]} : vector<8x96xf32> to vector<8x4xf32>
    %61 = vector.extract_strided_slice %11 {offsets = [0, 44], sizes = [8, 4], strides = [1, 1]} : vector<8x96xf32> to vector<8x4xf32>
    %62 = vector.extract_strided_slice %11 {offsets = [0, 76], sizes = [8, 4], strides = [1, 1]} : vector<8x96xf32> to vector<8x4xf32>
    %cst_24 = arith.constant dense<0.000000e+00> : vector<8x8xf32>
    %63 = tpu.matmul %60, %61, %cst_24 {dimension_numbers = #tpu.dot_dimension_numbers<[1], [1], [0], [0], [0, 0, 1, 0], [], []>} : vector<8x4xf32>, vector<8x4xf32>, vector<8x8xf32> -> vector<8x8xf32>
    %cst_25 = arith.constant dense<0xFF800000> : vector<8xf32>
    %64 = vector.multi_reduction <maximumf>, %63, %cst_25 [1] : vector<8x8xf32> to vector<8xf32>
    %65 = vector.shape_cast %64 : vector<8xf32> to vector<8x1xf32>
    %66 = vector.broadcast %65 : vector<8x1xf32> to vector<8x8xf32>
    %67 = arith.subf %63, %66 : vector<8x8xf32>
    %68 = math.exp %67 : vector<8x8xf32>
    %cst_26 = arith.constant dense<0.000000e+00> : vector<8xf32>
    %69 = vector.multi_reduction <add>, %68, %cst_26 [1] : vector<8x8xf32> to vector<8xf32>
    %70 = vector.shape_cast %69 : vector<8xf32> to vector<8x1xf32>
    %71 = tpu.reciprocal %70 {approx = true} : vector<8x1xf32> -> vector<8x1xf32>
    %72 = vector.broadcast %71 : vector<8x1xf32> to vector<8x8xf32>
    %73 = arith.mulf %68, %72 : vector<8x8xf32>
    %cst_27 = arith.constant dense<0.000000e+00> : vector<8x4xf32>
    %74 = tpu.matmul %73, %62, %cst_27 {dimension_numbers = #tpu.dot_dimension_numbers<[1], [0], [0], [1], [0, 0, 1, 1], [], []>} : vector<8x8xf32>, vector<8x4xf32>, vector<8x4xf32> -> vector<8x4xf32>
    %c0_28 = arith.constant 0 : index
    %c12 = arith.constant 12 : index
    %75 = vector.load %arg16[%c0_28, %c12] : memref<8x32xf32, #tpu.memory_space<vmem>>, vector<8x4xf32>
    tpu.vector_store %arg16[%c0_28, %c12], %74 {strides = array<i32>} : memref<8x32xf32, #tpu.memory_space<vmem>>, vector<8x4xf32>,
    %76 = vector.extract_strided_slice %11 {offsets = [0, 16], sizes = [8, 4], strides = [1, 1]} : vector<8x96xf32> to vector<8x4xf32>
    %77 = vector.extract_strided_slice %11 {offsets = [0, 48], sizes = [8, 4], strides = [1, 1]} : vector<8x96xf32> to vector<8x4xf32>
    %78 = vector.extract_strided_slice %11 {offsets = [0, 80], sizes = [8, 4], strides = [1, 1]} : vector<8x96xf32> to vector<8x4xf32>
    %cst_29 = arith.constant dense<0.000000e+00> : vector<8x8xf32>
    %79 = tpu.matmul %76, %77, %cst_29 {dimension_numbers = #tpu.dot_dimension_numbers<[1], [1], [0], [0], [0, 0, 1, 0], [], []>} : vector<8x4xf32>, vector<8x4xf32>, vector<8x8xf32> -> vector<8x8xf32>
    %cst_30 = arith.constant dense<0xFF800000> : vector<8xf32>
    %80 = vector.multi_reduction <maximumf>, %79, %cst_30 [1] : vector<8x8xf32> to vector<8xf32>
    %81 = vector.shape_cast %80 : vector<8xf32> to vector<8x1xf32>
    %82 = vector.broadcast %81 : vector<8x1xf32> to vector<8x8xf32>
    %83 = arith.subf %79, %82 : vector<8x8xf32>
    %84 = math.exp %83 : vector<8x8xf32>
    %cst_31 = arith.constant dense<0.000000e+00> : vector<8xf32>
    %85 = vector.multi_reduction <add>, %84, %cst_31 [1] : vector<8x8xf32> to vector<8xf32>
    %86 = vector.shape_cast %85 : vector<8xf32> to vector<8x1xf32>
    %87 = tpu.reciprocal %86 {approx = true} : vector<8x1xf32> -> vector<8x1xf32>
    %88 = vector.broadcast %87 : vector<8x1xf32> to vector<8x8xf32>
    %89 = arith.mulf %84, %88 : vector<8x8xf32>
    %cst_32 = arith.constant dense<0.000000e+00> : vector<8x4xf32>
    %90 = tpu.matmul %89, %78, %cst_32 {dimension_numbers = #tpu.dot_dimension_numbers<[1], [0], [0], [1], [0, 0, 1, 1], [], []>} : vector<8x8xf32>, vector<8x4xf32>, vector<8x4xf32> -> vector<8x4xf32>
    %c0_33 = arith.constant 0 : index
    %c16 = arith.constant 16 : index
    %91 = vector.load %arg16[%c0_33, %c16] : memref<8x32xf32, #tpu.memory_space<vmem>>, vector<8x4xf32>
    tpu.vector_store %arg16[%c0_33, %c16], %90 {strides = array<i32>} : memref<8x32xf32, #tpu.memory_space<vmem>>, vector<8x4xf32>,
    %92 = vector.extract_strided_slice %11 {offsets = [0, 20], sizes = [8, 4], strides = [1, 1]} : vector<8x96xf32> to vector<8x4xf32>
    %93 = vector.extract_strided_slice %11 {offsets = [0, 52], sizes = [8, 4], strides = [1, 1]} : vector<8x96xf32> to vector<8x4xf32>
    %94 = vector.extract_strided_slice %11 {offsets = [0, 84], sizes = [8, 4], strides = [1, 1]} : vector<8x96xf32> to vector<8x4xf32>
    %cst_34 = arith.constant dense<0.000000e+00> : vector<8x8xf32>
    %95 = tpu.matmul %92, %93, %cst_34 {dimension_numbers = #tpu.dot_dimension_numbers<[1], [1], [0], [0], [0, 0, 1, 0], [], []>} : vector<8x4xf32>, vector<8x4xf32>, vector<8x8xf32> -> vector<8x8xf32>
    %cst_35 = arith.constant dense<0xFF800000> : vector<8xf32>
    %96 = vector.multi_reduction <maximumf>, %95, %cst_35 [1] : vector<8x8xf32> to vector<8xf32>
    %97 = vector.shape_cast %96 : vector<8xf32> to vector<8x1xf32>
    %98 = vector.broadcast %97 : vector<8x1xf32> to vector<8x8xf32>
    %99 = arith.subf %95, %98 : vector<8x8xf32>
    %100 = math.exp %99 : vector<8x8xf32>
    %cst_36 = arith.constant dense<0.000000e+00> : vector<8xf32>
    %101 = vector.multi_reduction <add>, %100, %cst_36 [1] : vector<8x8xf32> to vector<8xf32>
    %102 = vector.shape_cast %101 : vector<8xf32> to vector<8x1xf32>
    %103 = tpu.reciprocal %102 {approx = true} : vector<8x1xf32> -> vector<8x1xf32>
    %104 = vector.broadcast %103 : vector<8x1xf32> to vector<8x8xf32>
    %105 = arith.mulf %100, %104 : vector<8x8xf32>
    %cst_37 = arith.constant dense<0.000000e+00> : vector<8x4xf32>
    %106 = tpu.matmul %105, %94, %cst_37 {dimension_numbers = #tpu.dot_dimension_numbers<[1], [0], [0], [1], [0, 0, 1, 1], [], []>} : vector<8x8xf32>, vector<8x4xf32>, vector<8x4xf32> -> vector<8x4xf32>
    %c0_38 = arith.constant 0 : index
    %c20 = arith.constant 20 : index
    %107 = vector.load %arg16[%c0_38, %c20] : memref<8x32xf32, #tpu.memory_space<vmem>>, vector<8x4xf32>
    tpu.vector_store %arg16[%c0_38, %c20], %106 {strides = array<i32>} : memref<8x32xf32, #tpu.memory_space<vmem>>, vector<8x4xf32>,
    %108 = vector.extract_strided_slice %11 {offsets = [0, 24], sizes = [8, 4], strides = [1, 1]} : vector<8x96xf32> to vector<8x4xf32>
    %109 = vector.extract_strided_slice %11 {offsets = [0, 56], sizes = [8, 4], strides = [1, 1]} : vector<8x96xf32> to vector<8x4xf32>
    %110 = vector.extract_strided_slice %11 {offsets = [0, 88], sizes = [8, 4], strides = [1, 1]} : vector<8x96xf32> to vector<8x4xf32>
    %cst_39 = arith.constant dense<0.000000e+00> : vector<8x8xf32>
    %111 = tpu.matmul %108, %109, %cst_39 {dimension_numbers = #tpu.dot_dimension_numbers<[1], [1], [0], [0], [0, 0, 1, 0], [], []>} : vector<8x4xf32>, vector<8x4xf32>, vector<8x8xf32> -> vector<8x8xf32>
    %cst_40 = arith.constant dense<0xFF800000> : vector<8xf32>
    %112 = vector.multi_reduction <maximumf>, %111, %cst_40 [1] : vector<8x8xf32> to vector<8xf32>
    %113 = vector.shape_cast %112 : vector<8xf32> to vector<8x1xf32>
    %114 = vector.broadcast %113 : vector<8x1xf32> to vector<8x8xf32>
    %115 = arith.subf %111, %114 : vector<8x8xf32>
    %116 = math.exp %115 : vector<8x8xf32>
    %cst_41 = arith.constant dense<0.000000e+00> : vector<8xf32>
    %117 = vector.multi_reduction <add>, %116, %cst_41 [1] : vector<8x8xf32> to vector<8xf32>
    %118 = vector.shape_cast %117 : vector<8xf32> to vector<8x1xf32>
    %119 = tpu.reciprocal %118 {approx = true} : vector<8x1xf32> -> vector<8x1xf32>
    %120 = vector.broadcast %119 : vector<8x1xf32> to vector<8x8xf32>
    %121 = arith.mulf %116, %120 : vector<8x8xf32>
    %cst_42 = arith.constant dense<0.000000e+00> : vector<8x4xf32>
    %122 = tpu.matmul %121, %110, %cst_42 {dimension_numbers = #tpu.dot_dimension_numbers<[1], [0], [0], [1], [0, 0, 1, 1], [], []>} : vector<8x8xf32>, vector<8x4xf32>, vector<8x4xf32> -> vector<8x4xf32>
    %c0_43 = arith.constant 0 : index
    %c24 = arith.constant 24 : index
    %123 = vector.load %arg16[%c0_43, %c24] : memref<8x32xf32, #tpu.memory_space<vmem>>, vector<8x4xf32>
    tpu.vector_store %arg16[%c0_43, %c24], %122 {strides = array<i32>} : memref<8x32xf32, #tpu.memory_space<vmem>>, vector<8x4xf32>,
    %124 = vector.extract_strided_slice %11 {offsets = [0, 28], sizes = [8, 4], strides = [1, 1]} : vector<8x96xf32> to vector<8x4xf32>
    %125 = vector.extract_strided_slice %11 {offsets = [0, 60], sizes = [8, 4], strides = [1, 1]} : vector<8x96xf32> to vector<8x4xf32>
    %126 = vector.extract_strided_slice %11 {offsets = [0, 92], sizes = [8, 4], strides = [1, 1]} : vector<8x96xf32> to vector<8x4xf32>
    %cst_44 = arith.constant dense<0.000000e+00> : vector<8x8xf32>
    %127 = tpu.matmul %124, %125, %cst_44 {dimension_numbers = #tpu.dot_dimension_numbers<[1], [1], [0], [0], [0, 0, 1, 0], [], []>} : vector<8x4xf32>, vector<8x4xf32>, vector<8x8xf32> -> vector<8x8xf32>
    %cst_45 = arith.constant dense<0xFF800000> : vector<8xf32>
    %128 = vector.multi_reduction <maximumf>, %127, %cst_45 [1] : vector<8x8xf32> to vector<8xf32>
    %129 = vector.shape_cast %128 : vector<8xf32> to vector<8x1xf32>
    %130 = vector.broadcast %129 : vector<8x1xf32> to vector<8x8xf32>
    %131 = arith.subf %127, %130 : vector<8x8xf32>
    %132 = math.exp %131 : vector<8x8xf32>
    %cst_46 = arith.constant dense<0.000000e+00> : vector<8xf32>
    %133 = vector.multi_reduction <add>, %132, %cst_46 [1] : vector<8x8xf32> to vector<8xf32>
    %134 = vector.shape_cast %133 : vector<8xf32> to vector<8x1xf32>
    %135 = tpu.reciprocal %134 {approx = true} : vector<8x1xf32> -> vector<8x1xf32>
    %136 = vector.broadcast %135 : vector<8x1xf32> to vector<8x8xf32>
    %137 = arith.mulf %132, %136 : vector<8x8xf32>
    %cst_47 = arith.constant dense<0.000000e+00> : vector<8x4xf32>
    %138 = tpu.matmul %137, %126, %cst_47 {dimension_numbers = #tpu.dot_dimension_numbers<[1], [0], [0], [1], [0, 0, 1, 1], [], []>} : vector<8x8xf32>, vector<8x4xf32>, vector<8x4xf32> -> vector<8x4xf32>
    %c0_48 = arith.constant 0 : index
    %c28 = arith.constant 28 : index
    %139 = vector.load %arg16[%c0_48, %c28] : memref<8x32xf32, #tpu.memory_space<vmem>>, vector<8x4xf32>
    tpu.vector_store %arg16[%c0_48, %c28], %138 {strides = array<i32>} : memref<8x32xf32, #tpu.memory_space<vmem>>, vector<8x4xf32>,
    %c0_49 = arith.constant 0 : index
    %c0_50 = arith.constant 0 : index
    %140 = vector.load %arg16[%c0_49, %c0_50] : memref<8x32xf32, #tpu.memory_space<vmem>>, vector<8x32xf32>
    %141 = arith.truncf %140 : vector<8x32xf32> to vector<8x32xbf16>
    %c0_51 = arith.constant 0 : index
    %c0_52 = arith.constant 0 : index
    %c0_53 = arith.constant 0 : index
    %142 = vector.load %arg5[%c0_51, %c0_52, %c0_53] : memref<1x32x32xbf16, #tpu.memory_space<vmem>>, vector<1x32x32xbf16>
    %143 = vector.shape_cast %142 : vector<1x32x32xbf16> to vector<32x32xbf16>
    %cst_54 = arith.constant dense<0.000000e+00> : vector<8x32xf32>
    %144 = tpu.matmul %141, %143, %cst_54 {dimension_numbers = #tpu.dot_dimension_numbers<[1], [0], [0], [1], [0, 0, 1, 1], [], []>} : vector<8x32xbf16>, vector<32x32xbf16>, vector<8x32xf32> -> vector<8x32xf32>
    %c0_55 = arith.constant 0 : index
    %c0_56 = arith.constant 0 : index
    %c0_57 = arith.constant 0 : index
    %145 = vector.load %arg6[%c0_55, %c0_56, %c0_57] : memref<1x1x32xf32, #tpu.memory_space<vmem>>, vector<1x1x32xf32>
    %146 = vector.shape_cast %145 : vector<1x1x32xf32> to vector<1x32xf32>
    %147 = vector.broadcast %146 : vector<1x32xf32> to vector<8x32xf32>
    %148 = arith.addf %144, %147 : vector<8x32xf32>
    %149 = arith.addf %3, %148 : vector<8x32xf32>
    %cst_58 = arith.constant dense<0.000000e+00> : vector<8xf32>
    %150 = vector.multi_reduction <add>, %149, %cst_58 [1] : vector<8x32xf32> to vector<8xf32>
    %151 = vector.shape_cast %150 : vector<8xf32> to vector<8x1xf32>
    %cst_59 = arith.constant 3.200000e+01 : f32
    %152 = vector.broadcast %cst_59 : f32 to vector<8x1xf32>
    %153 = arith.divf %151, %152 : vector<8x1xf32>
    %154 = vector.broadcast %153 : vector<8x1xf32> to vector<8x32xf32>
    %155 = arith.subf %149, %154 : vector<8x32xf32>
    %156 = arith.mulf %155, %155 : vector<8x32xf32>
    %cst_60 = arith.constant dense<0.000000e+00> : vector<8xf32>
    %157 = vector.multi_reduction <add>, %156, %cst_60 [1] : vector<8x32xf32> to vector<8xf32>
    %158 = vector.shape_cast %157 : vector<8xf32> to vector<8x1xf32>
    %cst_61 = arith.constant 3.200000e+01 : f32
    %159 = vector.broadcast %cst_61 : f32 to vector<8x1xf32>
    %160 = arith.divf %158, %159 : vector<8x1xf32>
    %161 = vector.broadcast %153 : vector<8x1xf32> to vector<8x32xf32>
    %162 = arith.subf %149, %161 : vector<8x32xf32>
    %cst_62 = arith.constant 9.99999974E-6 : f32
    %163 = vector.broadcast %cst_62 : f32 to vector<8x1xf32>
    %164 = arith.addf %160, %163 : vector<8x1xf32>
    %165 = math.rsqrt %164 : vector<8x1xf32>
    %166 = vector.broadcast %165 : vector<8x1xf32> to vector<8x32xf32>
    %167 = arith.mulf %162, %166 : vector<8x32xf32>
    %c0_63 = arith.constant 0 : index
    %c0_64 = arith.constant 0 : index
    %c0_65 = arith.constant 0 : index
    %168 = vector.load %arg11[%c0_63, %c0_64, %c0_65] : memref<1x1x32xf32, #tpu.memory_space<vmem>>, vector<1x1x32xf32>
    %169 = vector.shape_cast %168 : vector<1x1x32xf32> to vector<1x32xf32>
    %170 = vector.broadcast %169 : vector<1x32xf32> to vector<8x32xf32>
    %171 = arith.mulf %167, %170 : vector<8x32xf32>
    %c0_66 = arith.constant 0 : index
    %c0_67 = arith.constant 0 : index
    %c0_68 = arith.constant 0 : index
    %172 = vector.load %arg12[%c0_66, %c0_67, %c0_68] : memref<1x1x32xf32, #tpu.memory_space<vmem>>, vector<1x1x32xf32>
    %173 = vector.shape_cast %172 : vector<1x1x32xf32> to vector<1x32xf32>
    %174 = vector.broadcast %173 : vector<1x32xf32> to vector<8x32xf32>
    %175 = arith.addf %171, %174 : vector<8x32xf32>
    %176 = arith.truncf %175 : vector<8x32xf32> to vector<8x32xbf16>
    %c0_69 = arith.constant 0 : index
    %c0_70 = arith.constant 0 : index
    %c0_71 = arith.constant 0 : index
    %177 = vector.load %arg7[%c0_69, %c0_70, %c0_71] : memref<1x32x1024xbf16, #tpu.memory_space<vmem>>, vector<1x32x1024xbf16>
    %178 = vector.shape_cast %177 : vector<1x32x1024xbf16> to vector<32x1024xbf16>
    %cst_72 = arith.constant dense<0.000000e+00> : vector<8x1024xf32>
    %179 = tpu.matmul %176, %178, %cst_72 {dimension_numbers = #tpu.dot_dimension_numbers<[1], [0], [0], [1], [0, 0, 1, 1], [], []>} : vector<8x32xbf16>, vector<32x1024xbf16>, vector<8x1024xf32> -> vector<8x1024xf32>
    %c0_73 = arith.constant 0 : index
    %c0_74 = arith.constant 0 : index
    %c0_75 = arith.constant 0 : index
    %180 = vector.load %arg8[%c0_73, %c0_74, %c0_75] : memref<1x1x1024xf32, #tpu.memory_space<vmem>>, vector<1x1x1024xf32>
    %181 = vector.shape_cast %180 : vector<1x1x1024xf32> to vector<1x1024xf32>
    %182 = vector.broadcast %181 : vector<1x1024xf32> to vector<8x1024xf32>
    %183 = arith.addf %179, %182 : vector<8x1024xf32>
    %cst_76 = arith.constant 0.000000e+00 : f32
    %184 = vector.broadcast %cst_76 : f32 to vector<8x1024xf32>
    %185 = arith.maximumf %183, %184 : vector<8x1024xf32>
    %186 = arith.truncf %185 : vector<8x1024xf32> to vector<8x1024xbf16>
    %c0_77 = arith.constant 0 : index
    %c0_78 = arith.constant 0 : index
    %c0_79 = arith.constant 0 : index
    %187 = vector.load %arg9[%c0_77, %c0_78, %c0_79] : memref<1x1024x32xbf16, #tpu.memory_space<vmem>>, vector<1x1024x32xbf16>
    %188 = vector.shape_cast %187 : vector<1x1024x32xbf16> to vector<1024x32xbf16>
    %cst_80 = arith.constant dense<0.000000e+00> : vector<8x32xf32>
    %189 = tpu.matmul %186, %188, %cst_80 {dimension_numbers = #tpu.dot_dimension_numbers<[1], [0], [0], [1], [0, 0, 1, 1], [], []>} : vector<8x1024xbf16>, vector<1024x32xbf16>, vector<8x32xf32> -> vector<8x32xf32>
    %c0_81 = arith.constant 0 : index
    %c0_82 = arith.constant 0 : index
    %c0_83 = arith.constant 0 : index
    %190 = vector.load %arg10[%c0_81, %c0_82, %c0_83] : memref<1x1x32xf32, #tpu.memory_space<vmem>>, vector<1x1x32xf32>
    %191 = vector.shape_cast %190 : vector<1x1x32xf32> to vector<1x32xf32>
    %192 = vector.broadcast %191 : vector<1x32xf32> to vector<8x32xf32>
    %193 = arith.addf %189, %192 : vector<8x32xf32>
    %194 = arith.addf %175, %193 : vector<8x32xf32>
    %cst_84 = arith.constant dense<0.000000e+00> : vector<8xf32>
    %195 = vector.multi_reduction <add>, %194, %cst_84 [1] : vector<8x32xf32> to vector<8xf32>
    %196 = vector.shape_cast %195 : vector<8xf32> to vector<8x1xf32>
    %cst_85 = arith.constant 3.200000e+01 : f32
    %197 = vector.broadcast %cst_85 : f32 to vector<8x1xf32>
    %198 = arith.divf %196, %197 : vector<8x1xf32>
    %199 = vector.broadcast %198 : vector<8x1xf32> to vector<8x32xf32>
    %200 = arith.subf %194, %199 : vector<8x32xf32>
    %201 = arith.mulf %200, %200 : vector<8x32xf32>
    %cst_86 = arith.constant dense<0.000000e+00> : vector<8xf32>
    %202 = vector.multi_reduction <add>, %201, %cst_86 [1] : vector<8x32xf32> to vector<8xf32>
    %203 = vector.shape_cast %202 : vector<8xf32> to vector<8x1xf32>
    %cst_87 = arith.constant 3.200000e+01 : f32
    %204 = vector.broadcast %cst_87 : f32 to vector<8x1xf32>
    %205 = arith.divf %203, %204 : vector<8x1xf32>
    %206 = vector.broadcast %198 : vector<8x1xf32> to vector<8x32xf32>
    %207 = arith.subf %194, %206 : vector<8x32xf32>
    %cst_88 = arith.constant 9.99999974E-6 : f32
    %208 = vector.broadcast %cst_88 : f32 to vector<8x1xf32>
    %209 = arith.addf %205, %208 : vector<8x1xf32>
    %210 = math.rsqrt %209 : vector<8x1xf32>
    %211 = vector.broadcast %210 : vector<8x1xf32> to vector<8x32xf32>
    %212 = arith.mulf %207, %211 : vector<8x32xf32>
    %c0_89 = arith.constant 0 : index
    %c0_90 = arith.constant 0 : index
    %c0_91 = arith.constant 0 : index
    %213 = vector.load %arg13[%c0_89, %c0_90, %c0_91] : memref<1x1x32xf32, #tpu.memory_space<vmem>>, vector<1x1x32xf32>
    %214 = vector.shape_cast %213 : vector<1x1x32xf32> to vector<1x32xf32>
    %215 = vector.broadcast %214 : vector<1x32xf32> to vector<8x32xf32>
    %216 = arith.mulf %212, %215 : vector<8x32xf32>
    %c0_92 = arith.constant 0 : index
    %c0_93 = arith.constant 0 : index
    %c0_94 = arith.constant 0 : index
    %217 = vector.load %arg14[%c0_92, %c0_93, %c0_94] : memref<1x1x32xf32, #tpu.memory_space<vmem>>, vector<1x1x32xf32>
    %218 = vector.shape_cast %217 : vector<1x1x32xf32> to vector<1x32xf32>
    %219 = vector.broadcast %218 : vector<1x32xf32> to vector<8x32xf32>
    %220 = arith.addf %216, %219 : vector<8x32xf32>
    %c0_95 = arith.constant 0 : index
    %c0_96 = arith.constant 0 : index
    %221 = vector.load %arg15[%c0_95, %c0_96] : memref<8x32xf32, #tpu.memory_space<vmem>>, vector<8x32xf32>
    tpu.vector_store %arg15[%c0_95, %c0_96], %220 {strides = array<i32>} : memref<8x32xf32, #tpu.memory_space<vmem>>, vector<8x32xf32>,
    return
  }
  func.func @transform_0(%arg0: i32, %arg1: i32) -> (i32, i32) {
    %c0_i32 = arith.constant 0 : i32
    %c0_i32_0 = arith.constant 0 : i32
    return %arg0, %c0_i32 : i32, i32
  }
  func.func @transform_1(%arg0: i32, %arg1: i32) -> (i32, i32, i32) {
    %c0_i32 = arith.constant 0 : i32
    %c0_i32_0 = arith.constant 0 : i32
    %c0_i32_1 = arith.constant 0 : i32
    return %arg1, %c0_i32, %c0_i32_0 : i32, i32, i32
  }
  func.func @transform_2(%arg0: i32, %arg1: i32) -> (i32, i32, i32) {
    %c0_i32 = arith.constant 0 : i32
    %c0_i32_0 = arith.constant 0 : i32
    %c0_i32_1 = arith.constant 0 : i32
    return %arg1, %c0_i32, %c0_i32_0 : i32, i32, i32
  }
  func.func @transform_3(%arg0: i32, %arg1: i32) -> (i32, i32, i32) {
    %c0_i32 = arith.constant 0 : i32
    %c0_i32_0 = arith.constant 0 : i32
    %c0_i32_1 = arith.constant 0 : i32
    return %arg1, %c0_i32, %c0_i32_0 : i32, i32, i32
  }
  func.func @transform_4(%arg0: i32, %arg1: i32) -> (i32, i32, i32) {
    %c0_i32 = arith.constant 0 : i32
    %c0_i32_0 = arith.constant 0 : i32
    %c0_i32_1 = arith.constant 0 : i32
    return %arg1, %c0_i32, %c0_i32_0 : i32, i32, i32
  }
  func.func @transform_5(%arg0: i32, %arg1: i32) -> (i32, i32, i32) {
    %c0_i32 = arith.constant 0 : i32
    %c0_i32_0 = arith.constant 0 : i32
    %c0_i32_1 = arith.constant 0 : i32
    return %arg1, %c0_i32, %c0_i32_0 : i32, i32, i32
  }
  func.func @transform_6(%arg0: i32, %arg1: i32) -> (i32, i32, i32) {
    %c0_i32 = arith.constant 0 : i32
    %c0_i32_0 = arith.constant 0 : i32
    %c0_i32_1 = arith.constant 0 : i32
    return %arg1, %c0_i32, %c0_i32_0 : i32, i32, i32
  }
  func.func @transform_7(%arg0: i32, %arg1: i32) -> (i32, i32, i32) {
    %c0_i32 = arith.constant 0 : i32
    %c0_i32_0 = arith.constant 0 : i32
    %c0_i32_1 = arith.constant 0 : i32
    return %arg1, %c0_i32, %c0_i32_0 : i32, i32, i32
  }
  func.func @transform_8(%arg0: i32, %arg1: i32) -> (i32, i32, i32) {
    %c0_i32 = arith.constant 0 : i32
    %c0_i32_0 = arith.constant 0 : i32
    %c0_i32_1 = arith.constant 0 : i32
    return %arg1, %c0_i32, %c0_i32_0 : i32, i32, i32
  }
  func.func @transform_9(%arg0: i32, %arg1: i32) -> (i32, i32, i32) {
    %c0_i32 = arith.constant 0 : i32
    %c0_i32_0 = arith.constant 0 : i32
    %c0_i32_1 = arith.constant 0 : i32
    return %arg1, %c0_i32, %c0_i32_0 : i32, i32, i32
  }
  func.func @transform_10(%arg0: i32, %arg1: i32) -> (i32, i32, i32) {
    %c0_i32 = arith.constant 0 : i32
    %c0_i32_0 = arith.constant 0 : i32
    %c0_i32_1 = arith.constant 0 : i32
    return %arg1, %c0_i32, %c0_i32_0 : i32, i32, i32
  }
  func.func @transform_11(%arg0: i32, %arg1: i32) -> (i32, i32, i32) {
    %c0_i32 = arith.constant 0 : i32
    %c0_i32_0 = arith.constant 0 : i32
    %c0_i32_1 = arith.constant 0 : i32
    return %arg1, %c0_i32, %c0_i32_0 : i32, i32, i32
  }
  func.func @transform_12(%arg0: i32, %arg1: i32) -> (i32, i32, i32) {
    %c0_i32 = arith.constant 0 : i32
    %c0_i32_0 = arith.constant 0 : i32
    %c0_i32_1 = arith.constant 0 : i32
    return %arg1, %c0_i32, %c0_i32_0 : i32, i32, i32
  }
  func.func @transform_13(%arg0: i32, %arg1: i32) -> (i32, i32) {
    %c0_i32 = arith.constant 0 : i32
    %c0_i32_0 = arith.constant 0 : i32
    return %arg0, %c0_i32 : i32, i32
  }
}

</mosaic_0001>

<bundles_post_ra>
// kernel: tpu_custom_call.1
= control target key start
LH: loop header
LB: loop body
LE: loop exit
PB: predicated region body
PF: predicated region fallthrough
CT: control target
= control target key end

     0   :  { %s3681_s0 = inlined_call_operand.vmem [shape: f32[16,32], index: 0, kind: input, shape index: {}]   ;;  %s3682_s1 = inlined_call_operand.vmem [shape: bf16[2,32,96], index: 1, kind: input, shape index: {}]   ;;  %s3683_s2 = inlined_call_operand.vmem [shape: f32[2,1,96], index: 2, kind: input, shape index: {}]   ;;  %s3684_s3 = inlined_call_operand.vmem [shape: bf16[2,32,32], index: 3, kind: input, shape index: {}]   ;;  %s3685_s4 = inlined_call_operand.vmem [shape: f32[2,1,32], index: 4, kind: input, shape index: {}]   ;;  %s3686_s5 = inlined_call_operand.vmem [shape: bf16[2,32,1024], index: 5, kind: input, shape index: {}]   ;;  %s3687_s6 = inlined_call_operand.vmem [shape: f32[2,1,1024], index: 6, kind: input, shape index: {}]   ;;  %s3688_s7 = inlined_call_operand.vmem [shape: bf16[2,1024,32], index: 7, kind: input, shape index: {}]   ;;  %s3689_s8 = inlined_call_operand.vmem [shape: f32[2,1,32], index: 8, kind: input, shape index: {}]   ;;  %s3690_s9 = inlined_call_operand.vmem [shape: f32[2,1,32], index: 9, kind: input, shape index: {}]   ;;  %s3691_s10 = inlined_call_operand.vmem [shape: f32[2,1,32], index: 10, kind: input, shape index: {}]   ;;  %s3692_s11 = inlined_call_operand.vmem [shape: f32[2,1,32], index: 11, kind: input, shape index: {}]   ;;  %s3693_s12 = inlined_call_operand.vmem [shape: f32[2,1,32], index: 12, kind: input, shape index: {}]   ;;  %s3694_s13 = inlined_call_operand.hbm [shape: f32[16,32], index: 13, kind: output, shape index: {}]  }
   0x1   :  { %3710 = sst [smem:[#allocation19_spill]] %s3681_s0 }
   0x2   :  { %3711 = sst [smem:[#allocation20_spill]] %s3682_s1 }
   0x3   :  { %3712 = sst [smem:[#allocation21_spill]] %s3683_s2 }
   0x4   :  { %3713 = sst [smem:[#allocation22_spill]] %s3684_s3 }
   0x5   :  { %3714 = sst [smem:[#allocation23_spill]] %s3686_s5 }
   0x6   :  { %3715 = sst [smem:[#allocation24_spill]] %s3687_s6 }
   0x7   :  { %3716 = sst [smem:[#allocation25_spill]] %s3689_s8 }
   0x8   :  { %3717 = sst [smem:[#allocation26_spill]] %s3693_s12 }
   0x9   :  { %3718 = sst [smem:[#allocation27_spill]] %s3694_s13 }
   0xa   :  { %18 = vsyncpa [#allocation4], 0 }
   0xb   :  { %20 = vsyncpa [#allocation4 + $0x1], 0  ;;  %s3256_s25 = smov 0   ;;  %s3258_s26 = smov 0  }
   0xc   :  { %s3260_s27 = smov 0   ;;  %s3262_s28 = smov 0  }
   0xd   :  { %s3264_s29 = smov 0   ;;  %s3266_s30 = smov 0  }
   0xe   :  { %s3268_s14 = smov 0   ;;  %s3270_s15 = smov 0  }
   0xf LB: > { %3719 = sst [smem:[#allocation6_spill]] %s3125_s25  ;;  %s2433_s16 = sadd.s32 4294967295, %s3153_s15   ;;  %s3153_s15 = sphi %s3270_s15, %s26_s15   ;;  %s3149_s14 = sphi %s3268_s14, %s3761_s14   ;;  %s3145_s30 = sphi %s3266_s30, %s3760_s30   ;;  %s3141_s29 = sphi %s3264_s29, %s3759_s29   ;;  %s3137_s28 = sphi %s3262_s28, %s3758_s28   ;;  %s3133_s27 = sphi %s3260_s27, %s3757_s27   ;;  %s3129_s26 = sphi %s3258_s26, %s3756_s26   ;;  %s3125_s25 = sphi %s3256_s25, %s3755_s25  }
  0x10   : > { %3720 = sst [smem:[#allocation7_spill]] %s3129_s26  ;;  %s2434_s17 = sadd.s32 4294967294, %s3153_s15  }
  0x11   : > { %3721 = sst [smem:[#allocation8_spill]] %s3133_s27  ;;  %s35_s18 = sadd.s32 1, %s3145_s30 }
  0x12   : > { %3722 = sst [smem:[#allocation9_spill]] %s3137_s28  ;;  %p36_p0 = scmp.ge.s32.totalorder %s35_s18, 2 }
  0x13   : > { %3723 = sst [smem:[#allocation10_spill]] %s3141_s29  ;;  %s38_s19 = sadd.s32 1, %s3149_s14 }
  0x14   : > { %3724 = sst [smem:[#allocation11_spill]] %s3145_s30  ;;  %p393_p1 = scmp.ne.s32.totalorder %s3133_s27, %s3129_s26 }
  0x15   : > { %3725 = sst [smem:[#allocation12_spill]] %s3149_s14  ;;  %p394_p2 = scmp.eq.s32.totalorder %s2433_s16, 3 }
  0x16   : > { %3726 = sst [smem:[#allocation13_spill]] %s3153_s15  ;;  %s3763_s18 = smov (%p36_p0, %s35_s18), 0 }
  0x17   : > { %3727 = sst [smem:[#allocation14_spill]] %s3763_s18  ;;  %s3765_s19 = smov (!%p36_p0, %s38_s19), %s3149_s14 }
  0x18   : > { %p3305_p3 = por %p394_p2, %p393_p1  ;;  %p399_p4 = scmp.ne.s32.totalorder %s3129_s26, %s3125_s25 }
  0x19   : > { %p40_p5 = scmp.ge.s32.totalorder %s3765_s19, 2  ;;  %p400_p6 = scmp.eq.s32.totalorder %s2434_s17, 3 }
  0x1a   : > { %s3728_s20 = scalar_select %p3305_p3, 1, 0 }
  0x1b   : > { %p2437_p7 = scmp.ge.s32.totalorder %s3153_s15, 1  ;;  %p506_p8 = scmp.lt.s32.totalorder %s3153_s15, 5 }
  0x1c   : > { %3729 = sst [smem:[#allocation15_spill]] %s3728_s20  ;;  %s3767_s19 = smov (%p40_p5, %s3765_s19), 0 }
  0x1d   : > { %3730 = sst [smem:[#allocation16_spill]] %s3767_s19  ;;  %p3315_p9 = por %p400_p6, %p399_p4 }
  0x1e   : > { %p507_p10 = pnand %p2437_p7, %p506_p8  ;;  %s380_s22 = ssub.s32 %s3149_s14, %s3767_s19 }
  0x1f   : > { %s3731_s21 = scalar_select %p3315_p9, 1, 0 }
  0x20   : > { %s383_s23 = sadd.s32 1, %s3133_s27  ;;  %p381_p11 = scmp.eq.s32.totalorder %s380_s22, 0 }
  0x21   : > { %3732 = sst [smem:[#allocation17_spill]] %s3731_s21  ;;  %510 = sbr.rel (%p507_p10) target bundleno = 2361 (0x939), region = 72 }
  0x22   : > { %s3323_s24 = scalar_select %p381_p11, %s3133_s27, %s383_s23  }
  0x23   : > { %s3698_s16 = sand.u32 (!%p507_p10), 1, %s3129_s26   ;;  %p594_p12 = scmp.lt.s32.totalorder (!%p507_p10), %s3141_s29, 1 }
  0x24   : > { %3733 = sst [smem:[#allocation18_spill]] %s3323_s24  ;;  %s2438_s17 = sshll.u32 (!%p507_p10), %s3698_s16, 3 }
  0x25   : > { %p598_p13 = scmp.lt.s32.totalorder (!%p507_p10), %s3137_s28, 1  ;;  %s3734_s0 = sld [smem:[#allocation19_spill]] (!%p507_p10) }
  0x26   : > { %s595_s18 = scalar_select %p594_p12, %s3141_s29, 1 }
  0x27   : > { %s3332_s30 = scalar_select %p598_p13, %s3137_s28, 1 }
  0x28   : > { %s2439_s22 = sshll.u32 %s595_s18, 3  ;;  %s3735_s1 = sld [smem:[#allocation20_spill]] }
  0x29   : > { %s2824_s16 = sshll.u32 %s3332_s30, 4  ;;  %s3736_s2 = sld [smem:[#allocation21_spill]] }
  0x2a   : > { %s3737_s3 = sld [smem:[#allocation22_spill]]  ;;  %s2446_s23 = sshll.u32 %s3332_s30, 3 }
  0x2b   : > { %s597_s14 = scalar_lea.vmem %s3734_s0, %s2439_s22  ;;  %s2826_s22 = sshll.u32 %s3332_s30, 7 }
  0x2c   : > { %s3738_s5 = sld [smem:[#allocation23_spill]]  ;;  %s2827_s15 = sshll.u32 %s3332_s30, 9 }
  0x2d   : > { %s3739_s6 = sld [smem:[#allocation24_spill]]  ;;  %s3374_s18 = scalar_lea.vmem %s3688_s7, %s2827_s15 }
  0x2e   : > { %s602_s21 = scalar_lea.vmem %s3735_s1, %s2824_s16  ;;  %s633_s0 = scalar_lea.vmem %s3690_s9, %s3332_s30 }
  0x2f   : > { %s605_s20 = scalar_lea.vmem %s3736_s2, %s3332_s30  ;;  %s636_s1 = scalar_lea.vmem %s3691_s10, %s3332_s30 }
  0x30   : > { %s3348_s29 = scalar_lea.vmem %s3737_s3, %s2824_s16  ;;  %s3741_s26 = sld [smem:[#allocation26_spill]] }
  0x31   : > { %s3392_s8 = scalar_lea.vmem [#allocation3], %s2438_s17  ;;  %s3742_s2 = sld [smem:[#allocation9_spill]] }
  0x32   : > { %s3359_s27 = scalar_lea.vmem %s3738_s5, %s2826_s22  ;;  %s639_s5 = scalar_lea.vmem %s3692_s11, %s3332_s30 }
  0x33   : > { %s3364_s25 = scalar_lea.vmem %s3739_s6, %s2446_s23 }
  0x36   : > { %s642_s16 = scalar_lea.vmem %s3741_s26, %s3332_s30 }
  0x37   : > { %p2449_p0 = scmp.ne.s32.totalorder %s3742_s2, 0 }
  0x39   : > { %647 = sbr.rel (%p2449_p0) target bundleno = 64 (0x40), region = 76 }
  0x3e   : > { %v648_v0 = vld [vmem:[%s597_s14] sm:$0xff]  ;;  %vm649_vm0 = vcmask 261120  }
  0x3f   : > { %650 = vst.msk [vmem:[%s3392_s8] sm:$0xff] %vm649_vm0, %v648_v0 }
  0x40 PF: > { %v2829_v1 = vld [vmem:[%s602_s21 + $0x8] sm:$0xff]  ;;  %v2828_v2 = vld [vmem:[%s602_s21] sm:$0xff]  ;;  %vm673_vm1 = vcmask 261120   ;;  %s3155_s3 = smov 120   ;;  %s3156_s6 = smov 124   ;;  %vm693_vm2 = vcmask 31744  }
  0x41   : > { %683 = vmatpush.bf16.msra.mxu0 %v2829_v1  ;;  %v3014_v5 = vld [vmem:[%s605_s20] ss:$0 sm:$0xff]  ;;  %s3157_s14 = smov 96   ;;  %s3158_s21 = smov 88   ;;  %vm718_vm3 = vcmask 64512   ;;  %vm826_vm4 = vcmask 64544  }
  0x42   : > { %s3159_s17 = smov 92   ;;  %s3160_s20 = smov 84   ;;  %vm897_vm5 = vcmask 97344   ;;  %vm968_vm6 = vcmask 130144   ;;  %vm1039_vm7 = vcmask 162944   ;;  %vm1110_vm8 = vcmask 195744  }
  0x43   : > { %s3161_s19 = smov 76   ;;  %s3162_s15 = smov 60   ;;  %vm1181_vm9 = vcmask 228544   ;;  %vm1252_vm10 = vcmask 261344  }
  0x44   : > { %s3163_s28 = smov 64   ;;  %s3164_s12 = smov 80  }
  0x45   : > { %684 = vmatpush.bf16.msra.mxu0 %v2828_v2  ;;  %s3165_s22 = smov 72   ;;  %s3166_s23 = smov 56  }
  0x46   : > { %v3397_v3 = vld [vmem:[%s3392_s8] sm:$0xff]  ;;  %s3167_s24 = smov 108   ;;  %s3168_s13 = smov 116  }
  0x47   : > { %v652_v4 = vpack.c.bf16 %v3397_v3, %v3397_v3  ;;  %s3169_s26 = smov 112   ;;  %s3170_s2 = smov 68  }
  0x49   : > { %2458 = vmatmul.msk.bf16.vlgmr.msra.gmra.mxu0 %vm673_vm1, %v652_v4 }
  0xc6   : > { %v686_v6 = vpop.f32.mrf.mxu0 }
  0xc7   : > { %v3402_v7 = vadd.f32 %v3014_v5, %v686_v6 }
  0xc9   : > { %828 = vrot.lane.b32.xlu2 %v3402_v7, %s3155_s3  ;;  %757 = vrot.lane.b32.xlu1 %v3402_v7, %s3156_s6  ;;  %s3171_s3 = smov 104   ;;  %s3172_s6 = smov 100  }
  0xca   : > { %691 = vrot.lane.b32.xlu0 %v3402_v7, %s3157_s14  ;;  %s3173_s14 = smov 52  }
  0xce   : > { %v688_v8 = vpop.f32.mrf.mxu0 }
  0xd1   : > { %830 = vrot.lane.b32.xlu1 %v3402_v7, %s3158_s21  ;;  %s3174_s21 = smov 48  }
  0xd2   : > { %759 = vrot.lane.b32.xlu0 %v3402_v7, %s3159_s17  ;;  %s3175_s17 = smov 40  }
  0xd9   : > { %901 = vrot.lane.b32.xlu1 %v3402_v7, %s3160_s20  ;;  %s3176_s20 = smov 36  }
  0xe1   : > { %1043 = vrot.lane.b32.xlu1 %v3402_v7, %s3161_s19  ;;  %s3177_s19 = smov 4  }
 0x123   : > { %v829_v13 = vpop.permute.xlu2 %828 }
 0x13b   : > { %v758_v9 = vpop.permute.xlu1 %757 }
 0x13c   : > { %v692_v10 = vpop.permute.xlu0 %691 }
 0x13d   : > { %2459 = vmatpush.xpose.msk.msra.mxu1 %vm693_vm2, %v692_v10 }
 0x140   : > { %2460 = vmatmul.msk.f32.vlgmr.msra.gmra.mxu1 %vm693_vm2, %v3402_v7 }
 0x143   : > { %v831_v11 = vpop.permute.xlu1 %830 }
 0x144   : > { %v760_v12 = vpop.permute.xlu0 %759  ;;  %2465 = vmatpush.xpose.msk.msrb.mxu1 %vm693_vm2, %v831_v11 }
 0x145   : > { %2462 = vmatpush.xpose.msk.msrb.mxu0 %vm693_vm2, %v760_v12 }
 0x148   : > { %2463 = vmatmul.msk.f32.vlgmr.msrb.gmra.mxu0 %vm693_vm2, %v758_v9  ;;  %2466 = vmatmul.msk.f32.vlgmr.msrb.gmra.mxu1 %vm693_vm2, %v829_v13 }
 0x14b   : > { %v902_v20 = vpop.permute.xlu1 %901 }
 0x153   : > { %v1044_v21 = vpop.permute.xlu1 %1043 }
 0x1bd   : > { %v715_v14 = vpop.f32.mrf.mxu1 }
 0x1be   : > { %v719_v15 = vsel %vm718_vm3, %v715_v14, -inf }
 0x1bf   : > { %720 = vmax.xlane.f32.xlu2 %v719_v15 }
 0x1c5   : > { %v782_v16 = vpop.f32.mrf.mxu0  ;;  %v853_v17 = vpop.f32.mrf.mxu1 }
 0x1c6   : > { %v856_v18 = vsel %vm718_vm3, %v853_v17, -inf  ;;  %v785_v19 = vsel %vm718_vm3, %v782_v16, -inf }
 0x1c7   : > { %857 = vmax.xlane.f32.xlu1 %v856_v18  ;;  %786 = vmax.xlane.f32.xlu0 %v785_v19 }
 0x1d7   : > { %796 = vrot.lane.b32.xlu2 %v3402_v7, %s3162_s15  ;;  %s3178_s15 = smov 44  }
 0x1db   : > { %730 = vrot.lane.b32.xlu0 %v3402_v7, %s3163_s28  ;;  %s3179_s28 = smov 8  }
 0x1df   : > { %972 = vrot.lane.b32.xlu2 %v3402_v7, %s3164_s12  ;;  %s3180_s12 = smov 16  }
 0x1e0   : > { %1114 = vrot.lane.b32.xlu1 %v3402_v7, %s3165_s22  ;;  %s3181_s22 = smov 12  }
 0x1e3   : > { %867 = vrot.lane.b32.xlu0 %v3402_v7, %s3166_s23  ;;  %s3182_s23 = smov 24  }
 0x1e7   : > { %1041 = vrot.lane.b32.xlu2 %v3402_v7, %s3167_s24  ;;  %s3183_s24 = smov 20  }
 0x1eb   : > { %899 = vrot.lane.b32.xlu0 %v3402_v7, %s3168_s13  ;;  %s3184_s13 = smov 28  }
 0x1f3   : > { %970 = vrot.lane.b32.xlu0 %v3402_v7, %s3169_s26 }
 0x1fb   : > { %1185 = vrot.lane.b32.xlu0 %v3402_v7, %s3170_s2 }
 0x232   : > { %v721_v22 = vpop.xlane.xlu2 %720 }
 0x233   : > { %v722_v23 = vsub.f32 %v715_v14, %v721_v22 }
 0x235   : > { %v723_v24 = vmul.f32 1.442695, %v722_v23 }
 0x237   : > { %3021 = vpow2.f32 %v723_v24 }
 0x23a   : > { %v858_v25 = vpop.xlane.xlu1 %857  ;;  %v787_v27 = vpop.xlane.xlu0 %786 }
 0x23b   : > { %v859_v26 = vsub.f32 %v853_v17, %v858_v25  ;;  %v788_v28 = vsub.f32 %v782_v16, %v787_v27  ;;  %v797_v37 = vpop.permute.xlu2 %796 }
 0x23d   : > { %v3022_v29 = vpop.eup %3021  ;;  %v860_v30 = vmul.f32 1.442695, %v859_v26  ;;  %v789_v31 = vmul.f32 1.442695, %v788_v28 }
 0x23e   : > { %v725_v32 = vsel %vm718_vm3, %v3022_v29, 0.0 }
 0x23f   : > { %3023 = vpow2.f32 %v860_v30  ;;  %726 = vadd.xlane.f32.xlu2 %v725_v32 }
 0x240   : > { %3025 = vpow2.f32 %v789_v31 }
 0x243   : > { %v973_v40 = vpop.permute.xlu2 %972 }
 0x245   : > { %v3024_v33 = vpop.eup %3023 }
 0x246   : > { %v3026_v34 = vpop.eup %3025  ;;  %v862_v35 = vsel %vm718_vm3, %v3024_v33, 0.0 }
 0x247   : > { %863 = vadd.xlane.f32.xlu1 %v862_v35  ;;  %v791_v36 = vsel %vm718_vm3, %v3026_v34, 0.0 }
 0x248   : > { %792 = vadd.xlane.f32.xlu2 %v791_v36 }
 0x24b   : > { %v1042_v41 = vpop.permute.xlu2 %1041 }
 0x24d   : > { %v731_v38 = vpop.permute.xlu0 %730 }
 0x24e   : > { %751 = vmatpush.msra.mxu2 %v731_v38 }
 0x250   : > { %817 = vmatpush.msrb.mxu2 %v797_v37 }
 0x252   : > { %v1115_v42 = vpop.permute.xlu1 %1114 }
 0x255   : > { %v868_v39 = vpop.permute.xlu0 %867 }
 0x256   : > { %888 = vmatpush.msra.mxu3 %v868_v39 }
 0x258   : > { %2471 = vmatpush.xpose.msk.msrb.mxu3 %vm693_vm2, %v973_v40 }
 0x25d   : > { %v900_v45 = vpop.permute.xlu0 %899 }
 0x260   : > { %1112 = vrot.lane.b32.xlu2 %v3402_v7, %s3171_s3  ;;  %1183 = vrot.lane.b32.xlu1 %v3402_v7, %s3172_s6  ;;  %s3743_s3 = scalar_lea.vmem %s3685_s4, %s3332_s30 }
 0x265   : > { %v971_v52 = vpop.permute.xlu0 %970 }
 0x26d   : > { %v1186_v54 = vpop.permute.xlu0 %1185 }
 0x2b2   : > { %v727_v43 = vpop.xlane.xlu2 %726 }
 0x2b3   : > { %3027 = vrcp.f32 %v727_v43 }
 0x2b9   : > { %v3028_v44 = vpop.eup %3027 }
 0x2ba   : > { %v864_v46 = vpop.xlane.xlu1 %863  ;;  %v729_v47 = vmul.f32 %v3028_v44, %v3022_v29 }
 0x2bb   : > { %3029 = vrcp.f32 %v864_v46  ;;  %v793_v48 = vpop.xlane.xlu2 %792 }
 0x2bc   : > { %3031 = vrcp.f32 %v793_v48  ;;  %2461 = vmatmul.msk.f32.vlgmr.msra.gmra.mxu2 %vm718_vm3, %v729_v47 }
 0x2bd   : > { %2468 = vmatpush.xpose.msk.msra.mxu2 %vm693_vm2, %v902_v20 }
 0x2c1   : > { %v3030_v49 = vpop.eup %3029 }
 0x2c2   : > { %v3032_v50 = vpop.eup %3031  ;;  %v866_v51 = vmul.f32 %v3030_v49, %v3024_v33 }
 0x2c3   : > { %v795_v53 = vmul.f32 %v3032_v50, %v3026_v34  ;;  %v1113_v55 = vpop.permute.xlu2 %1112 }
 0x2c4   : > { %2467 = vmatmul.msk.f32.vlgmr.msra.gmra.mxu3 %vm718_vm3, %v866_v51 }
 0x2c5   : > { %2464 = vmatmul.msk.f32.vlgmr.msrb.gmra.mxu2 %vm718_vm3, %v795_v53  ;;  %2477 = vmatpush.xpose.msk.msra.mxu3 %vm693_vm2, %v1115_v42 }
 0x2c6   : > { %2474 = vmatpush.xpose.msk.msrb.mxu2 %vm693_vm2, %v1044_v21 }
 0x2cc   : > { %2472 = vmatmul.msk.f32.vlgmr.msrb.gmra.mxu3 %vm693_vm2, %v971_v52 }
 0x2cd   : > { %2469 = vmatmul.msk.f32.vlgmr.msra.gmra.mxu2 %vm693_vm2, %v900_v45 }
 0x2ce   : > { %2480 = vmatpush.xpose.msk.msra.mxu2 %vm693_vm2, %v1186_v54 }
 0x2d2   : > { %v1184_v56 = vpop.permute.xlu1 %1183 }
 0x2d4   : > { %2478 = vmatmul.msk.f32.vlgmr.msra.gmra.mxu3 %vm693_vm2, %v1113_v55 }
 0x2d5   : > { %2475 = vmatmul.msk.f32.vlgmr.msrb.gmra.mxu2 %vm693_vm2, %v1042_v41 }
 0x2dd   : > { %2481 = vmatmul.msk.f32.vlgmr.msra.gmra.mxu2 %vm693_vm2, %v1184_v56 }
 0x33f   : > { %v753_v57 = vpop.f32.mrf.mxu2 }
 0x340   : > { %756 = vst.msk [vmem:[#allocation2] sm:$0xff] %vm693_vm2, %v753_v57 }
 0x347   : > { %v3449_v58 = vpop.f32.mrf.mxu3 }
 0x348   : > { %v3451_v59 = vpop.f32.mrf.mxu2 }
 0x34f   : > { %v995_v60 = vpop.f32.mrf.mxu3 }
 0x350   : > { %v924_v61 = vpop.f32.mrf.mxu2  ;;  %v998_v62 = vsel %vm718_vm3, %v995_v60, -inf }
 0x351   : > { %v927_v63 = vsel %vm718_vm3, %v924_v61, -inf  ;;  %999 = vmax.xlane.f32.xlu2 %v998_v62  ;;  %v2831_v62 = vld [vmem:[%s3348_s29 + $0x8] sm:$0xff] }
 0x352   : > { %928 = vmax.xlane.f32.xlu0 %v927_v63  ;;  %1285 = vmatpush.bf16.msrb.mxu3 %v2831_v62  ;;  %v2830_v63 = vld [vmem:[%s3348_s29] sm:$0xff]  ;;  %v2838_v62 = vld [vmem:[%s3359_s27 + $0x2c] sm:$0xf0] }
 0x356   : > { %1286 = vmatpush.bf16.msrb.mxu3 %v2830_v63  ;;  %v2834_v63 = vld [vmem:[%s3359_s27 + $0x14] sm:$0xf] }
 0x357   : > { %v1137_v0 = vpop.f32.mrf.mxu3 }
 0x358   : > { %v1066_v1 = vpop.f32.mrf.mxu2  ;;  %v1140_v2 = vsel %vm718_vm3, %v1137_v0, -inf }
 0x359   : > { %v1069_v4 = vsel %vm718_vm3, %v1066_v1, -inf }
 0x35a   : > { %1070 = vmax.xlane.f32.xlu1 %v1069_v4  ;;  %1141 = vmax.xlane.f32.xlu0 %v1140_v2 }
 0x360   : > { %v1208_v5 = vpop.f32.mrf.mxu2 }
 0x361   : > { %v1211_v6 = vsel %vm718_vm3, %v1208_v5, -inf }
 0x362   : > { %1212 = vmax.xlane.f32.xlu2 %v1211_v6 }
 0x373   : > { %938 = vrot.lane.b32.xlu1 %v3402_v7, %s3173_s14 }
 0x37a   : > { %1009 = vrot.lane.b32.xlu2 %v3402_v7, %s3174_s21  ;;  %s3746_s21 = sld [smem:[#allocation10_spill]] }
 0x3c4   : > { %v1000_v8 = vpop.xlane.xlu2 %999 }
 0x3c5   : > { %v1001_v9 = vsub.f32 %v995_v60, %v1000_v8  ;;  %v929_v10 = vpop.xlane.xlu0 %928 }
 0x3c6   : > { %v930_v11 = vsub.f32 %v924_v61, %v929_v10 }
 0x3c7   : > { %v1002_v12 = vmul.f32 1.442695, %v1001_v9 }
 0x3c8   : > { %v931_v13 = vmul.f32 1.442695, %v930_v11 }
 0x3c9   : > { %3033 = vpow2.f32 %v1002_v12  ;;  %v3185_v12 = vmov 32.0  }
 0x3ca   : > { %3035 = vpow2.f32 %v931_v13 }
 0x3cd   : > { %v1071_v14 = vpop.xlane.xlu1 %1070  ;;  %v1142_v15 = vpop.xlane.xlu0 %1141 }
 0x3ce   : > { %v1072_v16 = vsub.f32 %v1066_v1, %v1071_v14  ;;  %v1143_v17 = vsub.f32 %v1137_v0, %v1142_v15 }
 0x3cf   : > { %v3034_v18 = vpop.eup %3033 }
 0x3d0   : > { %v3036_v19 = vpop.eup %3035  ;;  %v1073_v20 = vmul.f32 1.442695, %v1072_v16  ;;  %v1144_v21 = vmul.f32 1.442695, %v1143_v17  ;;  %v1004_v22 = vsel %vm718_vm3, %v3034_v18, 0.0 }
 0x3d1   : > { %1005 = vadd.xlane.f32.xlu0 %v1004_v22  ;;  %v933_v23 = vsel %vm718_vm3, %v3036_v19, 0.0 }
 0x3d2   : > { %3037 = vpow2.f32 %v1073_v20  ;;  %934 = vadd.xlane.f32.xlu1 %v933_v23  ;;  %v2526_v23 = vld [vmem:[%s3359_s27 + $0x40] sm:$0xf] }
 0x3d3   : > { %3039 = vpow2.f32 %v1144_v21 }
 0x3d5   : > { %v1213_v24 = vpop.xlane.xlu2 %1212 }
 0x3d6   : > { %v1214_v25 = vsub.f32 %v1208_v5, %v1213_v24  ;;  %v3015_v5 = vld [vmem:[%s3743_s3] ss:$0 sm:$0xff]  ;;  %s2237_s3 = sshll.u32 %s3392_s8, 4  ;;  %s2238_s3 = int_to_ptr.vmem [resolvable:$true] %s2237_s3 }
 0x3d7   : > { %v2844_v24 = vld [vmem:[%s3359_s27 + $0x5c] sm:$0xf0] }
 0x3d8   : > { %v3038_v26 = vpop.eup %3037  ;;  %v1215_v27 = vmul.f32 1.442695, %v1214_v25  ;;  %v2840_v25 = vld [vmem:[%s3359_s27 + $0x44] sm:$0xf] }
 0x3d9   : > { %v3040_v28 = vpop.eup %3039  ;;  %v1075_v29 = vsel %vm718_vm3, %v3038_v26, 0.0 }
 0x3da   : > { %3041 = vpow2.f32 %v1215_v27  ;;  %1076 = vadd.xlane.f32.xlu2 %v1075_v29  ;;  %v1146_v30 = vsel %vm718_vm3, %v3040_v28, 0.0  ;;  %v2528_v27 = vld [vmem:[%s3359_s27 + $0x60] sm:$0xf0]  ;;  %v2845_v29 = vld [vmem:[%s3359_s27 + $0x64] sm:$0xf0] }
 0x3db   : > { %1147 = vadd.xlane.f32.xlu0 %v1146_v30  ;;  %v2531_v30 = vor.u32 %v2840_v25, %v2528_v27  ;;  %v2855_v25 = vld [vmem:[%s3374_s18 + $0x38] sm:$0xff] }
 0x3dc   : > { %v2863_v27 = vld [vmem:[%s3374_s18 + $0x78] sm:$0xff] }
 0x3dd   : > { %v1010_v31 = vpop.permute.xlu2 %1009  ;;  %1469 = vmatpush.bf16.msrb.mxu2 %v2531_v30  ;;  %v2862_v30 = vld [vmem:[%s3374_s18 + $0x70] sm:$0xff] }
 0x3de   : > { %1030 = vmatpush.msra.mxu0 %v1010_v31 }
 0x3e0   : > { %v3042_v32 = vpop.eup %3041 }
 0x3e1   : > { %v1217_v33 = vsel %vm718_vm3, %v3042_v32, 0.0 }
 0x3e3   : > { %1218 = vadd.xlane.f32.xlu0 %v1217_v33  ;;  %v2536_v33 = vld [vmem:[%s3359_s27 + $0x68] sm:$0xf0] }
 0x3e5   : > { %v939_v34 = vpop.permute.xlu1 %938 }
 0x3e6   : > { %959 = vmatpush.msra.mxu1 %v939_v34 }
 0x3eb   : > { %1151 = vrot.lane.b32.xlu1 %v3402_v7, %s3175_s17  ;;  %s2821_s17 = sshll.u32 %s3746_s21, 3 }
 0x3f2   : > { %1222 = vrot.lane.b32.xlu2 %v3402_v7, %s3176_s20  ;;  %s3747_s20 = sld [smem:[#allocation7_spill]] }
 0x3f3   : > { %823 = vrot.lane.b32.xlu1 %v3451_v59, %s3177_s19 }
 0x3f7   : > { %1080 = vrot.lane.b32.xlu0 %v3402_v7, %s3178_s15 }
 0x3fa   : > { %894 = vrot.lane.b32.xlu2 %v3449_v58, %s3179_s28 }
 0x444   : > { %v1006_v35 = vpop.xlane.xlu0 %1005 }
 0x445   : > { %v935_v36 = vpop.xlane.xlu1 %934  ;;  %3043 = vrcp.f32 %v1006_v35  ;;  %v2494_v35 = vld [vmem:[%s3359_s27] sm:$0xf] }
 0x446   : > { %3045 = vrcp.f32 %v935_v36  ;;  %v2836_v36 = vld [vmem:[%s3359_s27 + $0x1c] sm:$0xf0] }
 0x44b   : > { %v3044_v37 = vpop.eup %3043 }
 0x44c   : > { %v3046_v38 = vpop.eup %3045  ;;  %v1008_v39 = vmul.f32 %v3044_v37, %v3034_v18  ;;  %v2832_v37 = vld [vmem:[%s3359_s27 + $0x4] sm:$0xf] }
 0x44d   : > { %v937_v40 = vmul.f32 %v3046_v38, %v3036_v19  ;;  %v1077_v42 = vpop.xlane.xlu2 %1076  ;;  %v2495_v38 = vor.u32 %v2836_v36, %v2494_v35  ;;  %v2877_v35 = vld [vmem:[%s3374_s18 + $0xe8] sm:$0xff]  ;;  %v2852_v36 = vld [vmem:[%s3374_s18 + $0x20] sm:$0xff] }
 0x44e   : > { %2473 = vmatmul.msk.f32.vlgmr.msra.gmra.mxu0 %vm718_vm3, %v1008_v39  ;;  %v1148_v41 = vpop.xlane.xlu0 %1147  ;;  %v2496_v39 = vld [vmem:[%s3359_s27 + $0x20] sm:$0xf0] }
 0x44f   : > { %2470 = vmatmul.msk.f32.vlgmr.msra.gmra.mxu1 %vm718_vm3, %v937_v40  ;;  %3047 = vrcp.f32 %v1148_v41  ;;  %v2502_v40 = vld [vmem:[%s3359_s27 + $0x8] sm:$0xf] }
 0x450   : > { %3049 = vrcp.f32 %v1077_v42  ;;  %v2837_v41 = vld [vmem:[%s3359_s27 + $0x24] sm:$0xf0]  ;;  %v2499_v42 = vor.u32 %v2832_v37, %v2496_v39  ;;  %v2868_v37 = vld [vmem:[%s3374_s18 + $0xa0] sm:$0xff] }
 0x451   : > { %v2876_v39 = vld [vmem:[%s3374_s18 + $0xe0] sm:$0xff] }
 0x452   : > { %1470 = vmatpush.bf16.msrb.mxu2 %v2499_v42  ;;  %v2859_v42 = vld [vmem:[%s3374_s18 + $0x58] sm:$0xff] }
 0x455   : > { %v3048_v43 = vpop.eup %3047  ;;  %v1223_v7 = vpop.permute.xlu2 %1222 }
 0x456   : > { %v1150_v44 = vmul.f32 %v3048_v43, %v3040_v28  ;;  %v1219_v46 = vpop.xlane.xlu0 %1218  ;;  %v3050_v48 = vpop.eup %3049  ;;  %v2534_v28 = vld [vmem:[%s3359_s27 + $0x48] sm:$0xf]  ;;  %v2503_v43 = vor.u32 %v2837_v41, %v2502_v40  ;;  %v2851_v40 = vld [vmem:[%s3374_s18 + $0x18] sm:$0xff] }
 0x457   : > { %3051 = vrcp.f32 %v1219_v46  ;;  %v1079_v50 = vmul.f32 %v3050_v48, %v3038_v26  ;;  %v2527_v26 = vor.u32 %v2844_v24, %v2526_v23  ;;  %v2535_v31 = vor.u32 %v2845_v29, %v2534_v28  ;;  %v2846_v48 = vld [vmem:[%s3359_s27 + $0x6c] sm:$0xf0]  ;;  %v2879_v28 = vld [vmem:[%s3374_s18 + $0xf8] sm:$0xff] }
 0x458   : > { %3053 = vrcp.f32 %v3185_v12  ;;  %v2870_v29 = vld [vmem:[%s3374_s18 + $0xb0] sm:$0xff]  ;;  %v2867_v41 = vld [vmem:[%s3374_s18 + $0x98] sm:$0xff] }
 0x45d   : > { %v1152_v45 = vpop.permute.xlu1 %1151  ;;  %v895_v49 = vpop.permute.xlu2 %894 }
 0x45e   : > { %1172 = vmatpush.msrb.mxu0 %v1152_v45  ;;  %v3052_v52 = vpop.eup %3051 }
 0x45f   : > { %2479 = vmatmul.msk.f32.vlgmr.msrb.gmra.mxu0 %vm718_vm3, %v1150_v44  ;;  %v1221_v53 = vmul.f32 %v3052_v52, %v3042_v32  ;;  %v3054_v13 = vpop.eup %3053  ;;  %v2841_v32 = vld [vmem:[%s3359_s27 + $0x4c] sm:$0xf]  ;;  %v2544_v52 = vld [vmem:[%s3359_s27 + $0x70] sm:$0xf0] }
 0x460   : > { %v1297_v14 = vmul.f32 32.0, %v3054_v13  ;;  %vm1301_vm11 = vweird.f32 %v3054_v13  ;;  %1456 = vmatpush.bf16.msra.mxu0 %v2527_v26  ;;  %v2539_v34 = vor.u32 %v2841_v32, %v2536_v33  ;;  %v2504_v44 = vld [vmem:[%s3359_s27 + $0x28] sm:$0xf0]  ;;  %v2871_v26 = vld [vmem:[%s3374_s18 + $0xb8] sm:$0xff] }
 0x461   : > { %v2853_v32 = vld [vmem:[%s3374_s18 + $0x28] sm:$0xff] }
 0x462   : > { %v1298_v15 = vsub.f32 1.0, %v1297_v14  ;;  %1495 = vmatpush.bf16.msra.mxu3 %v2539_v34  ;;  %v2869_v33 = vld [vmem:[%s3374_s18 + $0xa8] sm:$0xff] }
 0x463   : > { %v2861_v34 = vld [vmem:[%s3374_s18 + $0x68] sm:$0xff] }
 0x464   : > { %v1299_v16 = vmul.f32 %v3054_v13, %v1298_v15  ;;  %1457 = vmatpush.bf16.msra.mxu0 %v2495_v38  ;;  %v2860_v38 = vld [vmem:[%s3374_s18 + $0x60] sm:$0xff] }
 0x465   : > { %v824_v47 = vpop.permute.xlu1 %823 }
 0x466   : > { %827 = vst.msk [vmem:[#allocation2] sm:$0xff] %vm826_vm4, %v824_v47  ;;  %v1300_v17 = vadd.f32 %v3054_v13, %v1299_v16  ;;  %v2542_v47 = vld [vmem:[%s3359_s27 + $0x50] sm:$0xf] }
 0x467   : > { %898 = vst.msk [vmem:[#allocation2] sm:$0xff] %vm897_vm5, %v895_v49  ;;  %v2842_v49 = vld [vmem:[%s3359_s27 + $0x54] sm:$0xf] }
 0x468   : > { %v3485_v18 = vsel %vm1301_vm11, %v3054_v13, %v1300_v17  ;;  %v3016_v17 = vld [vmem:[%s633_s0] ss:$0 sm:$0xff]  ;;  %s3744_s0 = sld [smem:[#allocation25_spill]] }
 0x469   : > { %v1081_v51 = vpop.permute.xlu0 %1080 }
 0x46a   : > { %1101 = vmatpush.msrb.mxu1 %v1081_v51  ;;  %v2543_v51 = vor.u32 %v2846_v48, %v2542_v47  ;;  %v2849_v47 = vld [vmem:[%s3374_s18 + $0x8] sm:$0xff] }
 0x46b   : > { %2476 = vmatmul.msk.f32.vlgmr.msrb.gmra.mxu1 %vm718_vm3, %v1079_v50  ;;  %v2865_v48 = vld [vmem:[%s3374_s18 + $0x88] sm:$0xff] }
 0x46c   : > { %1243 = vmatpush.msra.mxu1 %v1223_v7  ;;  %v2833_v7 = vld [vmem:[%s3359_s27 + $0xc] sm:$0xf]  ;;  %1508 = vmatpush.bf16.msrb.mxu0 %v2543_v51  ;;  %v2848_v51 = vld [vmem:[%s3374_s18] sm:$0xff] }
 0x46d   : > { %v2507_v45 = vor.u32 %v2833_v7, %v2504_v44  ;;  %v2850_v7 = vld [vmem:[%s3374_s18 + $0x10] sm:$0xff] }
 0x46e   : > { %1482 = vmatpush.bf16.msrb.mxu1 %v2535_v31  ;;  %v2878_v31 = vld [vmem:[%s3374_s18 + $0xf0] sm:$0xff] }
 0x46f   : > { %1496 = vmatpush.bf16.msra.mxu3 %v2507_v45  ;;  %v2866_v44 = vld [vmem:[%s3374_s18 + $0x90] sm:$0xff] }
 0x470   : > { %v2858_v45 = vld [vmem:[%s3374_s18 + $0x50] sm:$0xff] }
 0x472   : > { %1483 = vmatpush.bf16.msrb.mxu1 %v2503_v43  ;;  %v2875_v43 = vld [vmem:[%s3374_s18 + $0xd8] sm:$0xff] }
 0x473   : > { %2482 = vmatmul.msk.f32.vlgmr.msra.gmra.mxu1 %vm718_vm3, %v1221_v53  ;;  %v2550_v53 = vld [vmem:[%s3359_s27 + $0x58] sm:$0xf] }
 0x4cb   : > { %v1032_v54 = vpop.f32.mrf.mxu0 }
 0x4cc   : > { %v961_v55 = vpop.f32.mrf.mxu1  ;;  %1036 = vrot.lane.b32.xlu1 %v1032_v54, %s3180_s12  ;;  %v2847_v54 = vld [vmem:[%s3359_s27 + $0x74] sm:$0xf0] }
 0x4cd   : > { %965 = vrot.lane.b32.xlu0 %v961_v55, %s3181_s22  ;;  %v2547_v55 = vor.u32 %v2842_v49, %v2544_v52  ;;  %v2857_v49 = vld [vmem:[%s3374_s18 + $0x48] sm:$0xff]  ;;  %v2864_v52 = vld [vmem:[%s3374_s18 + $0x80] sm:$0xff]  ;;  %s3748_s22 = sld [smem:[#allocation27_spill]] }
 0x4cf   : > { %1521 = vmatpush.bf16.msra.mxu2 %v2547_v55  ;;  %v2856_v55 = vld [vmem:[%s3374_s18 + $0x40] sm:$0xff] }
 0x4dc   : > { %v1174_v56 = vpop.f32.mrf.mxu0 }
 0x4dd   : > { %1178 = vrot.lane.b32.xlu0 %v1174_v56, %s3182_s23  ;;  %v2551_v56 = vor.u32 %v2847_v54, %v2550_v53  ;;  %v2887_v53 = vld [vmem:[%s3374_s18 + $0x138] sm:$0xff]  ;;  %s2235_s23 = scalar_lea.hbm %s3748_s22, %s2821_s17 }
 0x4de   : > { %v2903_v54 = vld [vmem:[%s3374_s18 + $0x1b8] sm:$0xff]  ;;  %s2239_s29 = sshll.u32 %s2235_s23, 4  ;;  %s2240_s29 = int_to_ptr.hbm [resolvable:$true] %s2239_s29 }
 0x4df   : > { %1534 = vmatpush.bf16.msra.mxu1 %v2551_v56  ;;  %v2872_v56 = vld [vmem:[%s3374_s18 + $0xc0] sm:$0xff]  ;;  %s3073_s6 = sshra.s32 %s2240_s29, 4  ;;  %s3074_s6 = int_to_ptr.hbm [resolvable:$true] %s3073_s6 }
 0x4e0   : > { %s3075_s14 = scalar_lea.hbm %s3074_s6, 8  ;;  %p3080_p5 = scmp.lt.s32.totalorder %s3074_s6, %s3748_s22 }
 0x4e1   : > { %p3076_p1 = scmp.ne.s32.totalorder %s3074_s6, %s3075_s14 }
 0x4e3   : > { %p3077_p2 = pnand %p3076_p1, %p3305_p3 }
 0x4e5   : > { %p3078_p4 = pneg %p3077_p2 }
 0x4e8   : > { %v1103_v57 = vpop.f32.mrf.mxu1 }
 0x4e9   : > { %1107 = vrot.lane.b32.xlu2 %v1103_v57, %s3183_s24  ;;  %v2843_v57 = vld [vmem:[%s3359_s27 + $0x5c] sm:$0xf] }
 0x4f0   : > { %v1245_v58 = vpop.f32.mrf.mxu1 }
 0x4f1   : > { %1249 = vrot.lane.b32.xlu1 %v1245_v58, %s3184_s13  ;;  %v2552_v58 = vld [vmem:[%s3359_s27 + $0x78] sm:$0xf0] }
 0x53e   : > { %v1037_v59 = vpop.permute.xlu1 %1036 }
 0x53f   : > { %v966_v60 = vpop.permute.xlu0 %965 }
 0x540   : > { %969 = vst.msk [vmem:[#allocation2] sm:$0xff] %vm968_vm6, %v966_v60 }
 0x541   : > { %1040 = vst.msk [vmem:[#allocation2] sm:$0xff] %vm1039_vm7, %v1037_v59  ;;  %v2510_v59 = vld [vmem:[%s3359_s27 + $0x10] sm:$0xf] }
 0x543   : > { %v1108_v61 = vpop.permute.xlu2 %1107 }
 0x544   : > { %1111 = vst.msk [vmem:[#allocation2] sm:$0xff] %vm1110_vm8, %v1108_v61  ;;  %v2555_v61 = vor.u32 %v2843_v57, %v2552_v58  ;;  %v2895_v57 = vld [vmem:[%s3374_s18 + $0x178] sm:$0xff] }
 0x545   : > { %v2911_v58 = vld [vmem:[%s3374_s18 + $0x1f8] sm:$0xff] }
 0x54f   : > { %v1179_v0 = vpop.permute.xlu0 %1178 }
 0x550   : > { %1182 = vst.msk [vmem:[#allocation2] sm:$0xff] %vm1181_vm9, %v1179_v0  ;;  %v2511_v0 = vor.u32 %v2838_v62, %v2510_v59  ;;  %v2886_v59 = vld [vmem:[%s3374_s18 + $0x130] sm:$0xff]  ;;  %v2901_v62 = vld [vmem:[%s3374_s18 + $0x1a8] sm:$0xff] }
 0x552   : > { %1509 = vmatpush.bf16.msrb.mxu0 %v2511_v0  ;;  %v2910_v0 = vld [vmem:[%s3374_s18 + $0x1f0] sm:$0xff] }
 0x563   : > { %v1250_v1 = vpop.permute.xlu1 %1249 }
 0x564   : > { %1253 = vst.msk [vmem:[#allocation2] sm:$0xff] %vm1252_vm10, %v1250_v1  ;;  %v2512_v1 = vld [vmem:[%s3359_s27 + $0x30] sm:$0xf0] }
 0x56b   : > { %v1254_v2 = vld [vmem:[#allocation2] sm:$0xff] }
 0x56c   : > { %v1255_v4 = vpack.c.bf16 %v1254_v2, %v1254_v2  ;;  %v2518_v2 = vld [vmem:[%s3359_s27 + $0x18] sm:$0xf] }
 0x56e   : > { %2491 = vmatmul.msk.bf16.vlgmr.msrb.gmra.mxu3 %vm673_vm1, %v1255_v4  ;;  %v2839_v4 = vld [vmem:[%s3359_s27 + $0x34] sm:$0xf0] }
 0x56f   : > { %1547 = vmatpush.bf16.msrb.mxu3 %v2555_v61  ;;  %v2885_v61 = vld [vmem:[%s3374_s18 + $0x128] sm:$0xff] }
 0x5f1   : > { %v1288_v6 = vpop.f32.mrf.mxu3 }
 0x5f2   : > { %v1289_v8 = vadd.f32 %v3015_v5, %v1288_v6  ;;  %v2515_v5 = vor.u32 %v2834_v63, %v2512_v1  ;;  %v2519_v6 = vor.u32 %v2839_v4, %v2518_v2  ;;  %v2894_v63 = vld [vmem:[%s3374_s18 + $0x170] sm:$0xff]  ;;  %v2884_v1 = vld [vmem:[%s3374_s18 + $0x120] sm:$0xff]  ;;  %v2893_v4 = vld [vmem:[%s3374_s18 + $0x168] sm:$0xff] }
 0x5f3   : > { %v2900_v2 = vld [vmem:[%s3374_s18 + $0x1a0] sm:$0xff] }
 0x5f4   : > { %v1292_v9 = vadd.f32 %v1289_v8, %v3397_v3  ;;  %v2835_v8 = vld [vmem:[%s3359_s27 + $0x1c] sm:$0xf]  ;;  %1522 = vmatpush.bf16.msra.mxu2 %v2515_v5  ;;  %1535 = vmatpush.bf16.msra.mxu1 %v2519_v6  ;;  %v2909_v5 = vld [vmem:[%s3374_s18 + $0x1e8] sm:$0xff] }
 0x5f5   : > { %v2883_v6 = vld [vmem:[%s3374_s18 + $0x118] sm:$0xff] }
 0x5f6   : > { %v1293_v10 = vsel %vm673_vm1, %v1292_v9, 0.0 }
 0x5f7   : > { %1294 = vadd.xlane.f32.xlu2 %v1293_v10 }
 0x5f9   : > { %v1290_v11 = vpop.f32.mrf.mxu3 }
 0x66a   : > { %v1295_v3 = vpop.xlane.xlu2 %1294 }
 0x66b   : > { %v1303_v19 = vmul.f32 %v3485_v18, %v1295_v3 }
 0x66d   : > { %v3488_v20 = vsub.f32 %v1292_v9, %v1303_v19  ;;  %v2520_v9 = vld [vmem:[%s3359_s27 + $0x38] sm:$0xf0]  ;;  %v3017_v19 = vld [vmem:[%s636_s1] ss:$0 sm:$0xff]  ;;  %s3745_s1 = scalar_lea.vmem %s3744_s0, %s3332_s30 }
 0x66e   : > { %v2523_v10 = vor.u32 %v2835_v8, %v2520_v9  ;;  %v2899_v8 = vld [vmem:[%s3374_s18 + $0x198] sm:$0xff]  ;;  %v2892_v9 = vld [vmem:[%s3374_s18 + $0x160] sm:$0xff] }
 0x66f   : > { %v1305_v21 = vmul.f32 %v3488_v20, %v3488_v20 }
 0x670   : > { %1548 = vmatpush.bf16.msrb.mxu3 %v2523_v10  ;;  %v2908_v10 = vld [vmem:[%s3374_s18 + $0x1e0] sm:$0xff] }
 0x671   : > { %v1306_v22 = vsel %vm673_vm1, %v1305_v21, 0.0 }
 0x672   : > { %1307 = vadd.xlane.f32.xlu0 %v1306_v22 }
 0x6e5   : > { %v1308_v46 = vpop.xlane.xlu0 %1307 }
 0x6e6   : > { %v1309_v50 = vmul.f32 %v1308_v46, %v3485_v18  ;;  %v2874_v46 = vld [vmem:[%s3374_s18 + $0xd0] sm:$0xff] }
 0x6e8   : > { %v1310_v60 = vadd.f32 1e-05, %v1309_v50  ;;  %v2873_v50 = vld [vmem:[%s3374_s18 + $0xc8] sm:$0xff] }
 0x6ea   : > { %3055 = vrsqrt.f32 %v1310_v60  ;;  %vm1317_vm13 = vweird.f32 %v1310_v60 }
 0x6f0   : > { %v3056_v11 = vpop.eup %3055 }
 0x6f1   : > { %v1312_v12 = vmul.f32 %v3056_v11, %v1310_v60  ;;  %vm1318_vm12 = vweird.f32 %v3056_v11  ;;  %v2902_v60 = vld [vmem:[%s3374_s18 + $0x1b0] sm:$0xff] }
 0x6f2   : > { %vm1319_vm14 = vmor %vm1317_vm13, %vm1318_vm12 }
 0x6f3   : > { %v1313_v13 = vmul.f32 %v3056_v11, %v1312_v12  ;;  %v2898_v12 = vld [vmem:[%s3374_s18 + $0x190] sm:$0xff] }
 0x6f5   : > { %v1314_v14 = vmul.f32 0.5, %v1313_v13  ;;  %v2891_v13 = vld [vmem:[%s3374_s18 + $0x158] sm:$0xff] }
 0x6f7   : > { %v1315_v15 = vsub.f32 1.5, %v1314_v14  ;;  %v2907_v14 = vld [vmem:[%s3374_s18 + $0x1d8] sm:$0xff] }
 0x6f9   : > { %v1316_v16 = vmul.f32 %v3056_v11, %v1315_v15  ;;  %v2881_v15 = vld [vmem:[%s3374_s18 + $0x108] sm:$0xff] }
 0x6fb   : > { %v1320_v3 = vsel %vm1319_vm14, %v3056_v11, %v1316_v16  ;;  %v2882_v11 = vld [vmem:[%s3374_s18 + $0x110] sm:$0xff]  ;;  %v2897_v16 = vld [vmem:[%s3374_s18 + $0x188] sm:$0xff] }
 0x6fc   : > { %v1321_v21 = vmul.f32 %v1320_v3, %v3488_v20  ;;  %v2854_v20 = vld [vmem:[%s3374_s18 + $0x30] sm:$0xff] }
 0x6fd   : > { %v2906_v3 = vld [vmem:[%s3374_s18 + $0x1d0] sm:$0xff] }
 0x6fe   : > { %v1326_v22 = vmul.f32 %v3016_v17, %v1321_v21  ;;  %v2890_v17 = vld [vmem:[%s3374_s18 + $0x150] sm:$0xff]  ;;  %v2896_v21 = vld [vmem:[%s3374_s18 + $0x180] sm:$0xff] }
 0x700   : > { %v3537_v23 = vadd.f32 %v3017_v19, %v1326_v22  ;;  %v2880_v19 = vld [vmem:[%s3374_s18 + $0x100] sm:$0xff]  ;;  %v2889_v22 = vld [vmem:[%s3374_s18 + $0x148] sm:$0xff] }
 0x702   : > { %v1332_v24 = vpack.c.bf16 %v3537_v23, %v3537_v23 }
 0x704   : > { %2556 = vmatmul.msk.bf16.vlgmr.msra.gmra.mxu0 %vm673_vm1, %v1332_v24  ;;  %2557 = vmatmul.msk.bf16.vlgmr.msrb.gmra.mxu2 %vm673_vm1, %v1332_v24 }
 0x705   : > { %2558 = vmatmul.msk.bf16.vlgmr.msrb.gmra.mxu1 %vm673_vm1, %v1332_v24  ;;  %2559 = vmatmul.msk.bf16.vlgmr.msra.gmra.mxu3 %vm673_vm1, %v1332_v24 }
 0x706   : > { %2086 = vmatpush.bf16.msra.mxu0 %v2855_v25  ;;  %2112 = vmatpush.bf16.msrb.mxu1 %v2871_v26  ;;  %v2888_v25 = vld [vmem:[%s3374_s18 + $0x140] sm:$0xff] }
 0x707   : > { %2099 = vmatpush.bf16.msrb.mxu2 %v2863_v27  ;;  %2125 = vmatpush.bf16.msra.mxu3 %v2879_v28  ;;  %v2904_v26 = vld [vmem:[%s3374_s18 + $0x1c0] sm:$0xff] }
 0x708   : > { %v1349_v27 = vld [vmem:[%s3364_s25] sm:$0xff] }
 0x709   : > { %v1351_v28 = vperm.slane %v1349_v27, 0 }
 0x70a   : > { %2087 = vmatpush.bf16.msra.mxu0 %v2854_v20  ;;  %2113 = vmatpush.bf16.msrb.mxu1 %v2870_v29  ;;  %v1353_v20 = vperm.slane %v1349_v27, 2 }
 0x70b   : > { %2100 = vmatpush.bf16.msrb.mxu2 %v2862_v30  ;;  %2126 = vmatpush.bf16.msra.mxu3 %v2878_v31 }
 0x70e   : > { %2088 = vmatpush.bf16.msra.mxu0 %v2853_v32  ;;  %2114 = vmatpush.bf16.msrb.mxu1 %v2869_v33 }
 0x70f   : > { %2101 = vmatpush.bf16.msrb.mxu2 %v2861_v34  ;;  %2127 = vmatpush.bf16.msra.mxu3 %v2877_v35  ;;  %v1352_v34 = vperm.slane %v1349_v27, 1 }
 0x712   : > { %2089 = vmatpush.bf16.msra.mxu0 %v2852_v36  ;;  %2115 = vmatpush.bf16.msrb.mxu1 %v2868_v37  ;;  %v1354_v36 = vperm.slane %v1349_v27, 3 }
 0x713   : > { %2102 = vmatpush.bf16.msrb.mxu2 %v2860_v38  ;;  %2128 = vmatpush.bf16.msra.mxu3 %v2876_v39 }
 0x714   : > { %2560 = vmatmul.msk.bf16.vlgmr.msrb.gmra.mxu0 %vm673_vm1, %v1332_v24  ;;  %2561 = vmatmul.msk.bf16.vlgmr.msra.gmra.mxu2 %vm673_vm1, %v1332_v24 }
 0x715   : > { %2562 = vmatmul.msk.bf16.vlgmr.msra.gmra.mxu1 %vm673_vm1, %v1332_v24  ;;  %2563 = vmatmul.msk.bf16.vlgmr.msrb.gmra.mxu3 %vm673_vm1, %v1332_v24  ;;  %v2905_v24 = vld [vmem:[%s3374_s18 + $0x1c8] sm:$0xff] }
 0x716   : > { %2090 = vmatpush.bf16.msra.mxu0 %v2851_v40  ;;  %2116 = vmatpush.bf16.msrb.mxu1 %v2867_v41 }
 0x717   : > { %2103 = vmatpush.bf16.msrb.mxu2 %v2859_v42  ;;  %2129 = vmatpush.bf16.msra.mxu3 %v2875_v43 }
 0x71a   : > { %2091 = vmatpush.bf16.msra.mxu0 %v2850_v7  ;;  %2117 = vmatpush.bf16.msrb.mxu1 %v2866_v44 }
 0x71b   : > { %2104 = vmatpush.bf16.msrb.mxu2 %v2858_v45  ;;  %2130 = vmatpush.bf16.msra.mxu3 %v2874_v46 }
 0x71e   : > { %2092 = vmatpush.bf16.msra.mxu0 %v2849_v47  ;;  %2118 = vmatpush.bf16.msrb.mxu1 %v2865_v48  ;;  %v1355_v48 = vperm.slane %v1349_v27, 4 }
 0x71f   : > { %2105 = vmatpush.bf16.msrb.mxu2 %v2857_v49  ;;  %2131 = vmatpush.bf16.msra.mxu3 %v2873_v50  ;;  %v1357_v50 = vperm.slane %v1349_v27, 6 }
 0x722   : > { %2093 = vmatpush.bf16.msra.mxu0 %v2848_v51  ;;  %2119 = vmatpush.bf16.msrb.mxu1 %v2864_v52 }
 0x723   : > { %2106 = vmatpush.bf16.msrb.mxu2 %v2856_v55  ;;  %2132 = vmatpush.bf16.msra.mxu3 %v2872_v56 }
 0x726   : > { %2138 = vmatpush.bf16.msrb.mxu0 %v2887_v53  ;;  %2164 = vmatpush.bf16.msra.mxu1 %v2903_v54 }
 0x727   : > { %2151 = vmatpush.bf16.msra.mxu2 %v2895_v57  ;;  %2177 = vmatpush.bf16.msrb.mxu3 %v2911_v58  ;;  %v1356_v57 = vperm.slane %v1349_v27, 5 }
 0x72a   : > { %2139 = vmatpush.bf16.msrb.mxu0 %v2886_v59  ;;  %2165 = vmatpush.bf16.msra.mxu1 %v2902_v60  ;;  %v1358_v59 = vperm.slane %v1349_v27, 7 }
 0x72b   : > { %2152 = vmatpush.bf16.msra.mxu2 %v2894_v63  ;;  %2178 = vmatpush.bf16.msrb.mxu3 %v2910_v0 }
 0x72e   : > { %2140 = vmatpush.bf16.msrb.mxu0 %v2885_v61  ;;  %2166 = vmatpush.bf16.msra.mxu1 %v2901_v62 }
 0x72f   : > { %2153 = vmatpush.bf16.msra.mxu2 %v2893_v4  ;;  %2179 = vmatpush.bf16.msrb.mxu3 %v2909_v5 }
 0x732   : > { %2141 = vmatpush.bf16.msrb.mxu0 %v2884_v1  ;;  %2167 = vmatpush.bf16.msra.mxu1 %v2900_v2 }
 0x733   : > { %2154 = vmatpush.bf16.msra.mxu2 %v2892_v9  ;;  %2180 = vmatpush.bf16.msrb.mxu3 %v2908_v10 }
 0x736   : > { %2142 = vmatpush.bf16.msrb.mxu0 %v2883_v6  ;;  %2168 = vmatpush.bf16.msra.mxu1 %v2899_v8 }
 0x737   : > { %2155 = vmatpush.bf16.msra.mxu2 %v2891_v13  ;;  %2181 = vmatpush.bf16.msrb.mxu3 %v2907_v14 }
 0x73a   : > { %2143 = vmatpush.bf16.msrb.mxu0 %v2882_v11  ;;  %2169 = vmatpush.bf16.msra.mxu1 %v2898_v12 }
 0x73b   : > { %2156 = vmatpush.bf16.msra.mxu2 %v2890_v17  ;;  %2182 = vmatpush.bf16.msrb.mxu3 %v2906_v3 }
 0x73e   : > { %2144 = vmatpush.bf16.msrb.mxu0 %v2881_v15  ;;  %2170 = vmatpush.bf16.msra.mxu1 %v2897_v16  ;;  %v3018_v15 = vld [vmem:[%s3745_s1] ss:$0 sm:$0xff] }
 0x73f   : > { %2157 = vmatpush.bf16.msra.mxu2 %v2889_v22  ;;  %2183 = vmatpush.bf16.msrb.mxu3 %v2905_v24 }
 0x742   : > { %2145 = vmatpush.bf16.msrb.mxu0 %v2880_v19  ;;  %2171 = vmatpush.bf16.msra.mxu1 %v2896_v21 }
 0x743   : > { %2158 = vmatpush.bf16.msra.mxu2 %v2888_v25  ;;  %2184 = vmatpush.bf16.msrb.mxu3 %v2904_v26 }
 0x781   : > { %v1459_v29 = vpop.f32.mrf.mxu0 }
 0x782   : > { %v1460_v30 = vadd.f32 %v1459_v29, %v1351_v28  ;;  %v1485_v31 = vpop.f32.mrf.mxu1 }
 0x783   : > { %v1486_v32 = vadd.f32 %v1485_v31, %v1353_v20 }
 0x784   : > { %v1554_v33 = vmax.f32 %v1460_v30, 0.0 }
 0x785   : > { %v1556_v35 = vmax.f32 %v1486_v32, 0.0 }
 0x786   : > { %v1562_v37 = vpack.c.bf16 %v1554_v33, %v1554_v33 }
 0x787   : > { %v1564_v38 = vpack.c.bf16 %v1556_v35, %v1556_v35  ;;  %v1472_v39 = vpop.f32.mrf.mxu2 }
 0x788   : > { %v1473_v40 = vadd.f32 %v1472_v39, %v1352_v34  ;;  %v1498_v41 = vpop.f32.mrf.mxu3  ;;  %2094 = vmatmul.bf16.vlgmr.msra.gmra.mxu0 %v1562_v37 }
 0x789   : > { %v1499_v42 = vadd.f32 %v1498_v41, %v1354_v36  ;;  %2120 = vmatmul.bf16.vlgmr.msrb.gmra.mxu1 %v1564_v38  ;;  %v1461_v43 = vpop.f32.mrf.mxu0 }
 0x78a   : > { %v1555_v7 = vmax.f32 %v1473_v40, 0.0  ;;  %v1487_v44 = vpop.f32.mrf.mxu1 }
 0x78b   : > { %v1557_v45 = vmax.f32 %v1499_v42, 0.0 }
 0x78c   : > { %v1563_v46 = vpack.c.bf16 %v1555_v7, %v1555_v7 }
 0x78d   : > { %v1565_v47 = vpack.c.bf16 %v1557_v45, %v1557_v45 }
 0x78e   : > { %2107 = vmatmul.bf16.vlgmr.msrb.gmra.mxu2 %v1563_v46 }
 0x78f   : > { %2133 = vmatmul.bf16.vlgmr.msra.gmra.mxu3 %v1565_v47  ;;  %v1474_v49 = vpop.f32.mrf.mxu2 }
 0x790   : > { %v1500_v51 = vpop.f32.mrf.mxu3 }
 0x791   : > { %v1511_v52 = vpop.f32.mrf.mxu0 }
 0x792   : > { %v1512_v53 = vadd.f32 %v1511_v52, %v1355_v48  ;;  %v1537_v54 = vpop.f32.mrf.mxu1 }
 0x793   : > { %v1538_v55 = vadd.f32 %v1537_v54, %v1357_v50  ;;  %v3020_v54 = vld [vmem:[%s642_s16] ss:$0 sm:$0xff]  ;;  %s3079_s16 = scalar_lea.hbm %s3748_s22, 16 }
 0x794   : > { %v1558_v56 = vmax.f32 %v1512_v53, 0.0  ;;  %p3081_p6 = scmp.lt.s32.totalorder %s3079_s16, %s3075_s14 }
 0x795   : > { %v1560_v58 = vmax.f32 %v1538_v55, 0.0 }
 0x796   : > { %v1566_v60 = vpack.c.bf16 %v1558_v56, %v1558_v56  ;;  %p3082_p7 = por %p3081_p6, %p3080_p5 }
 0x797   : > { %v1568_v61 = vpack.c.bf16 %v1560_v58, %v1560_v58  ;;  %v1524_v62 = vpop.f32.mrf.mxu2 }
 0x798   : > { %v1525_v63 = vadd.f32 %v1524_v62, %v1356_v57  ;;  %v1550_v0 = vpop.f32.mrf.mxu3  ;;  %2146 = vmatmul.bf16.vlgmr.msrb.gmra.mxu0 %v1566_v60  ;;  %p3083_p8 = pnand %p3082_p7, %p3078_p4 }
 0x799   : > { %v1551_v1 = vadd.f32 %v1550_v0, %v1358_v59  ;;  %2172 = vmatmul.bf16.vlgmr.msra.gmra.mxu1 %v1568_v61  ;;  %v1513_v2 = vpop.f32.mrf.mxu0 }
 0x79a   : > { %v1559_v4 = vmax.f32 %v1525_v63, 0.0  ;;  %v1539_v5 = vpop.f32.mrf.mxu1 }
 0x79b   : > { %v1561_v6 = vmax.f32 %v1551_v1, 0.0 }
 0x79c   : > { %v1567_v8 = vpack.c.bf16 %v1559_v4, %v1559_v4 }
 0x79d   : > { %v1569_v9 = vpack.c.bf16 %v1561_v6, %v1561_v6 }
 0x79e   : > { %2159 = vmatmul.bf16.vlgmr.msra.gmra.mxu2 %v1567_v8 }
 0x79f   : > { %2185 = vmatmul.bf16.vlgmr.msrb.gmra.mxu3 %v1569_v9  ;;  %v1526_v10 = vpop.f32.mrf.mxu2 }
 0x7a0   : > { %v1552_v11 = vpop.f32.mrf.mxu3 }
 0x805   : > { %v2095_v12 = vpop.f32.mrf.mxu0 }
 0x806   : > { %v2121_v13 = vpop.f32.mrf.mxu1  ;;  %v2096_v3 = vadd.f32 %v3018_v15, %v2095_v12 }
 0x80d   : > { %v2097_v14 = vpop.f32.mrf.mxu0 }
 0x80e   : > { %v2123_v16 = vpop.f32.mrf.mxu1 }
 0x811   : > { %v2108_v17 = vpop.f32.mrf.mxu2 }
 0x812   : > { %v2134_v19 = vpop.f32.mrf.mxu3  ;;  %v2109_v21 = vadd.f32 %v2108_v17, %v2096_v3 }
 0x814   : > { %v2122_v25 = vadd.f32 %v2121_v13, %v2109_v21 }
 0x815   : > { %v2147_v22 = vpop.f32.mrf.mxu0 }
 0x816   : > { %v2173_v24 = vpop.f32.mrf.mxu1  ;;  %v2135_v28 = vadd.f32 %v2134_v19, %v2122_v25 }
 0x818   : > { %v2148_v30 = vadd.f32 %v2147_v22, %v2135_v28 }
 0x819   : > { %v2110_v26 = vpop.f32.mrf.mxu2 }
 0x81a   : > { %v2136_v27 = vpop.f32.mrf.mxu3 }
 0x81d   : > { %v2149_v20 = vpop.f32.mrf.mxu0 }
 0x81e   : > { %v2175_v29 = vpop.f32.mrf.mxu1 }
 0x821   : > { %v2160_v31 = vpop.f32.mrf.mxu2 }
 0x822   : > { %v2161_v32 = vadd.f32 %v2160_v31, %v2148_v30  ;;  %v2186_v33 = vpop.f32.mrf.mxu3 }
 0x824   : > { %v2174_v34 = vadd.f32 %v2173_v24, %v2161_v32 }
 0x826   : > { %v2187_v35 = vadd.f32 %v2186_v33, %v2174_v34 }
 0x828   : > { %v2190_v36 = vadd.f32 %v2187_v35, %v3537_v23 }
 0x829   : > { %v2162_v37 = vpop.f32.mrf.mxu2 }
 0x82a   : > { %v2188_v38 = vpop.f32.mrf.mxu3  ;;  %v2191_v39 = vsel %vm673_vm1, %v2190_v36, 0.0 }
 0x82b   : > { %2192 = vadd.xlane.f32.xlu1 %v2191_v39 }
 0x89e   : > { %v2193_v40 = vpop.xlane.xlu1 %2192 }
 0x89f   : > { %v2194_v41 = vmul.f32 %v2193_v40, %v3485_v18 }
 0x8a1   : > { %v2195_v42 = vsub.f32 %v2190_v36, %v2194_v41 }
 0x8a3   : > { %v2196_v43 = vmul.f32 %v2195_v42, %v2195_v42 }
 0x8a5   : > { %v2197_v7 = vsel %vm673_vm1, %v2196_v43, 0.0 }
 0x8a6   : > { %2198 = vadd.xlane.f32.xlu2 %v2197_v7 }
 0x919   : > { %v2199_v44 = vpop.xlane.xlu2 %2198 }
 0x91a   : > { %v2200_v45 = vmul.f32 %v2199_v44, %v3485_v18  ;;  %v3019_v18 = vld [vmem:[%s639_s5] ss:$0 sm:$0xff]  ;;  %s3751_s5 = sand.u32 1, %s3747_s20  }
 0x91b   : > { %s2225_s27 = scalar_lea.sflag [#allocation4], %s3751_s5 }
 0x91c   : > { %v2201_v46 = vadd.f32 1e-05, %v2200_v45 }
 0x91e   : > { %3057 = vrsqrt.f32 %v2201_v46  ;;  %vm2208_vm0 = vweird.f32 %v2201_v46 }
 0x924   : > { %v3058_v23 = vpop.eup %3057 }
 0x925   : > { %v2203_v47 = vmul.f32 %v3058_v23, %v2201_v46  ;;  %vm2209_vm15 = vweird.f32 %v3058_v23 }
 0x926   : > { %vm2210_vm2 = vmor %vm2208_vm0, %vm2209_vm15 }
 0x927   : > { %v2204_v48 = vmul.f32 %v3058_v23, %v2203_v47 }
 0x929   : > { %v2205_v49 = vmul.f32 0.5, %v2204_v48 }
 0x92b   : > { %v2206_v50 = vsub.f32 1.5, %v2205_v49 }
 0x92d   : > { %v2207_v51 = vmul.f32 %v3058_v23, %v2206_v50 }
 0x92f   : > { %v2211_v52 = vsel %vm2210_vm2, %v3058_v23, %v2207_v51 }
 0x930   : > { %v2212_v53 = vmul.f32 %v2211_v52, %v2195_v42 }
 0x932   : > { %v2217_v55 = vmul.f32 %v3019_v18, %v2212_v53 }
 0x934   : > { %v2222_v56 = vadd.f32 %v3020_v54, %v2217_v55 }
 0x936   : > { %2223 = vst.msk [vmem:[%s3392_s8] sm:$0xff] %vm673_vm1, %v2222_v56 }
 0x937   : > { %3086 = shalt.err (!%p3083_p8)
}
 0x938   : > { %2912 = dma.vmem_to_hbm [thread:$0]  (%p3305_p3), %s2238_s3, 128, %s2240_s29, %s2225_s27  }
 0x939 PF: > { %s3752_s8 = sld [smem:[#allocation13_spill]] }
 0x93a   : > { %s3753_s1 = sld [smem:[#allocation6_spill]] }
 0x93f   : > { %p2918_p10 = scmp.ge.s32.totalorder %s3752_s8, 2 }
 0x940   : > { %s2251_s17 = sand.u32 1, %s3753_s1  }
 0x941   : > { %p2915_p11 = pnand %p2918_p10, %p3315_p9  ;;  %s2252_s20 = scalar_lea.sflag [#allocation4], %s2251_s17 }
 0x943   : > { %p2916_p12 = pneg %p2915_p11 }
 0x945   : > { %3120 = dma.done.wait (%p2916_p12), %s2252_s20, 128  }
 0x946   : > { %3122 = vsyncadd (%p2916_p12), %s2252_s20, 4294967168  ;;  %s26_s15 = sadd.s32 1, %s3752_s8   ;;  %s3755_s25 = sld [smem:[#allocation7_spill]] }
 0x947   : > { %p23_p13 = scmp.ge.s32.totalorder %s26_s15, 6   ;;  %s3756_s26 = sld [smem:[#allocation8_spill]] }
 0x948   : > { %s3757_s27 = sld [smem:[#allocation18_spill]] }
 0x949   : > { %s3758_s28 = sld [smem:[#allocation11_spill]]  ;;  %25 = sbr.rel (!%p23_p13) target bundleno = 15 (0xf), region = 147 }
 0x94a   : > { %s3759_s29 = sld [smem:[#allocation12_spill]] }
 0x94b   : > { %s3760_s30 = sld [smem:[#allocation14_spill]] }
 0x94c   : > { %s3761_s14 = sld [smem:[#allocation16_spill]] }
 0x94e   :  { %2258 = vsyncpa [#allocation4], 1 }
 0x94f   :  { %2260 = vsyncpa [#allocation4 + $0x1], 1 }

</bundles_post_ra>
